<compile_context>
chip_gen: v5e
topology: v5e:2x2
jax: 0.10.0
libtpu: 0.0.40
codegen_flags: <defaults>
</compile_context>

<pallas_src>
import math
import functools

import jax
import jax.numpy as jnp
import numpy as np
from jax.experimental import pallas as pl
from jax.experimental.pallas import tpu as pltpu


# -----------------------------------------------------------------------------
# Fused encoder kernel: grid = (batch, layer)
# -----------------------------------------------------------------------------
def _encoder_kernel(x_ref, nd2_ref,
                    wqkvs_ref, bqkvs_ref, wo_ref, bo_ref,
                    w1_ref, b1_ref, w2_ref, b2_ref, norms_ref,
                    fg_ref, fb_ref,
                    xout_ref, series_ref, prior_ref, sigma_ref,
                    attn_acc_ref,
                    *, n_heads, n_layers, compute_dtype):
    l = pl.program_id(1)
    L, D = xout_ref.shape[1], xout_ref.shape[2]
    H = n_heads
    E = D // H
    cdt = compute_dtype

    scale = 1.0 / math.sqrt(E)
    inv_sqrt2pi = 1.0 / math.sqrt(2.0 * math.pi)
    log3 = math.log(3.0)

    # Residual-stream carry lives in the xout VMEM block (same block index for every
    # layer step of a given batch element).  Initialize it from the input on layer 0.
    @pl.when(l == 0)
    def _():
        xout_ref[...] = x_ref[...]

    x = xout_ref[0]                       # (L, D) f32 carried activations
    nd2 = nd2_ref[...]                    # (L, L) = -0.5 * |i-j|^2

    def matmul(a, w):
        # MXU matmul in compute_dtype (bf16 on v6e/v7x), f32 accumulation.
        return jnp.dot(a.astype(cdt), w.astype(cdt),
                       preferred_element_type=jnp.float32)

    # --- AttentionLayer projections: one fused (L,D) x (D, 3D+H) matmul ---------
    qkvs = matmul(x, wqkvs_ref[0]) + bqkvs_ref[0]   # (L, 3D+H) f32
    q = qkvs[:, 0 * D:1 * D]
    k = qkvs[:, 1 * D:2 * D]
    v = qkvs[:, 2 * D:3 * D]
    sig = qkvs[:, 3 * D:3 * D + H]                  # (L, H)

    # sigma transform: sigmoid(5x)+1e-5 ; 3**x - 1.  Stored compactly as (L, H);
    # the (B, H, L, L) broadcast (pure repeat along keys) is done by the wrapper.
    sig_act = jax.nn.sigmoid(sig * 5.0) + 1e-5
    sig_act = jnp.exp(sig_act * log3) - 1.0         # (L, H)
    sigma_ref[0, 0] = sig_act

    # --- AnomalyAttention per head (H small & static; loop unrolled) ------------
    for h in range(H):
        qh = q[:, h * E:(h + 1) * E]
        kh = k[:, h * E:(h + 1) * E]
        vh = v[:, h * E:(h + 1) * E]

        # scores = Q K^T (contract feature dims; mask_flag=False -> no masking)
        scores = jax.lax.dot_general(
            qh.astype(cdt), kh.astype(cdt), (((1,), (1,)), ((), ())),
            preferred_element_type=jnp.float32) * scale          # (L, L) f32

        # numerically-stable softmax over keys; only the (L,1) denom is inverted
        m = jnp.max(scores, axis=-1, keepdims=True)
        e = jnp.exp(scores - m)
        inv_den = 1.0 / jnp.sum(e, axis=-1, keepdims=True)       # (L, 1)
        series_h = e * inv_den
        series_ref[0, 0, h] = series_h

        # gaussian prior built from (L,1) sigma scalars and precomputed -0.5*dist^2
        inv_sig = 1.0 / sig_act[:, h:h + 1]                      # (L, 1)
        prior_ref[0, 0, h] = (inv_sig * inv_sqrt2pi) * jnp.exp(
            nd2 * (inv_sig * inv_sig))

        # head output -> lane-concat scratch; one full-width out-projection later
        attn_acc_ref[:, h * E:(h + 1) * E] = matmul(series_h, vh)   # (L, E)

    # single K = D out-projection instead of H matmuls with K = E
    new_x = matmul(attn_acc_ref[...], wo_ref[0]) + bo_ref[0]        # (L, D)

    def layernorm(z, g, b):
        mu = jnp.mean(z, axis=-1, keepdims=True)
        var = jnp.mean((z - mu) ** 2, axis=-1, keepdims=True)
        return (z - mu) * jax.lax.rsqrt(var + 1e-5) * g + b

    norms = norms_ref[0]                                            # (4, D)
    xr = x + new_x
    xn = layernorm(xr, norms[0], norms[1])
    y = jnp.maximum(matmul(xn, w1_ref[0]) + b1_ref[0], 0.0)         # (L, d_ff) relu
    y = matmul(y, w2_ref[0]) + b2_ref[0]                            # (L, D)
    zn = layernorm(xn + y, norms[2], norms[3])

    @pl.when(l == n_layers - 1)
    def _():
        # fuse the Encoder's final LayerNorm into the last layer step
        xout_ref[0] = layernorm(zn, fg_ref[...], fb_ref[...])

    @pl.when(l < n_layers - 1)
    def _():
        xout_ref[0] = zn


# -----------------------------------------------------------------------------
# Weight prep (one-time): transpose to (in,out), fuse QKV+sigma, stack per layer
# -----------------------------------------------------------------------------
def prep_encoder_params(layer_params, final_norm, compute_dtype=jnp.float32):
    f32 = jnp.float32

    def stack(fn):
        return jnp.stack([fn(p) for p in layer_params], axis=0)

    return {
        'wqkvs': stack(lambda p: jnp.concatenate(
            [p['wq'].T, p['wk'].T, p['wv'].T, p['wsig'].T], axis=1)).astype(compute_dtype),
        'bqkvs': stack(lambda p: jnp.concatenate(
            [p['bq'], p['bk'], p['bv'], p['bsig']], axis=1)).astype(f32),
        'wo': stack(lambda p: p['wo'].T).astype(compute_dtype),
        'bo': stack(lambda p: p['bo']).astype(f32),
        'w1': stack(lambda p: p['w1'].T).astype(compute_dtype),
        'b1': stack(lambda p: p['b1']).astype(f32),
        'w2': stack(lambda p: p['w2'].T).astype(compute_dtype),
        'b2': stack(lambda p: p['b2']).astype(f32),
        'norms': stack(lambda p: jnp.concatenate(
            [p['n1g'], p['n1b'], p['n2g'], p['n2b']], axis=0)).astype(f32),
        'fg': jnp.asarray(final_norm['g'], f32),
        'fb': jnp.asarray(final_norm['b'], f32),
        'n_heads': int(layer_params[0]['bsig'].shape[-1]),
        'n_layers': len(layer_params),
        'compute_dtype': compute_dtype,
    }


# -----------------------------------------------------------------------------
# Wrapper
# -----------------------------------------------------------------------------
def encoder_forward_pallas(x, dist, prep):
    B, L, D = x.shape
    H = prep['n_heads']
    NL = prep['n_layers']
    d_ff = prep['w1'].shape[2]
    cdt = prep['compute_dtype']

    nd2 = (-0.5) * (dist * dist)   # (L, L), hoisted out of the kernel / head loop

    kernel = functools.partial(_encoder_kernel, n_heads=H, n_layers=NL,
                               compute_dtype=cdt)

    in_specs = [
        pl.BlockSpec((1, L, D), lambda b, l: (b, 0, 0)),                 # x
        pl.BlockSpec((L, L), lambda b, l: (0, 0)),                       # -0.5*dist^2
        pl.BlockSpec((1, D, 3 * D + H), lambda b, l: (l, 0, 0)),         # wqkvs
        pl.BlockSpec((1, 1, 3 * D + H), lambda b, l: (l, 0, 0)),         # bqkvs
        pl.BlockSpec((1, D, D), lambda b, l: (l, 0, 0)),                 # wo
        pl.BlockSpec((1, 1, D), lambda b, l: (l, 0, 0)),                 # bo
        pl.BlockSpec((1, D, d_ff), lambda b, l: (l, 0, 0)),              # w1
        pl.BlockSpec((1, 1, d_ff), lambda b, l: (l, 0, 0)),              # b1
        pl.BlockSpec((1, d_ff, D), lambda b, l: (l, 0, 0)),              # w2
        pl.BlockSpec((1, 1, D), lambda b, l: (l, 0, 0)),                 # b2
        pl.BlockSpec((1, 4, D), lambda b, l: (l, 0, 0)),                 # LN1/LN2 g,b
        pl.BlockSpec((1, D), lambda b, l: (0, 0)),                       # final gamma
        pl.BlockSpec((1, D), lambda b, l: (0, 0)),                       # final beta
    ]
    out_shape = (
        jax.ShapeDtypeStruct((B, L, D), jnp.float32),            # x out (carried)
        jax.ShapeDtypeStruct((NL, B, H, L, L), jnp.float32),     # series
        jax.ShapeDtypeStruct((NL, B, H, L, L), jnp.float32),     # prior
        jax.ShapeDtypeStruct((NL, B, L, H), jnp.float32),        # sigma (compact)
    )
    out_specs = (
        pl.BlockSpec((1, L, D), lambda b, l: (b, 0, 0)),         # same block across l
        pl.BlockSpec((1, 1, H, L, L), lambda b, l: (l, b, 0, 0, 0)),
        pl.BlockSpec((1, 1, H, L, L), lambda b, l: (l, b, 0, 0, 0)),
        pl.BlockSpec((1, 1, L, H), lambda b, l: (l, b, 0, 0)),
    )

    # Only raise the scoped-VMEM budget for large configs (default is fine here);
    # cap comfortably below large-chip limits.
    itemsize = jnp.dtype(cdt).itemsize
    wbytes = itemsize * (D * (3 * D + H) + D * D + 2 * D * d_ff)
    obytes = 4 * (L * D + 2 * H * L * L + L * H)
    xbytes = 4 * (L * D + L * L + (3 * D + H) + d_ff + 8 * D)
    est_vmem = 2 * (wbytes + obytes + xbytes) + 4 * L * D
    cp_kwargs = dict(dimension_semantics=("parallel", "arbitrary"))
    if est_vmem > 32 * 1024 * 1024:
        cp_kwargs["vmem_limit_bytes"] = int(min(2 * est_vmem, 120 * 1024 * 1024))

    x_out, series, prior, sigma_c = pl.pallas_call(
        kernel,
        out_shape=out_shape,
        grid=(B, NL),
        in_specs=in_specs,
        out_specs=out_specs,
        scratch_shapes=[pltpu.VMEM((L, D), jnp.float32)],
        compiler_params=pltpu.CompilerParams(**cp_kwargs),
    )(x, nd2, prep['wqkvs'], prep['bqkvs'], prep['wo'], prep['bo'],
      prep['w1'], prep['b1'], prep['w2'], prep['b2'], prep['norms'],
      prep['fg'], prep['fb'])

    series_list = [series[i] for i in range(NL)]
    prior_list = [prior[i] for i in range(NL)]
    # sigma was written compactly as (B, L, H); expand to the module's (B, H, L, L)
    sigma_list = [jnp.broadcast_to(jnp.transpose(sigma_c[i], (0, 2, 1))[..., None],
                                   (B, H, L, L)) for i in range(NL)]
    return x_out, series_list, prior_list, sigma_list


# -----------------------------------------------------------------------------
# Pure-JAX reference (mirrors PyTorch Encoder semantics) for verification
# -----------------------------------------------------------------------------
def _layernorm_ref(x, g, b):
    mu = jnp.mean(x, axis=-1, keepdims=True)
    var = jnp.mean((x - mu) ** 2, axis=-1, keepdims=True)
    return (x - mu) * jax.lax.rsqrt(var + 1e-5) * g + b


def encoder_layer_ref(x, dist, p):
    B, L, D = x.shape
    H = p['bsig'].shape[-1]
    E = D // H
    q = (x @ p['wq'].T + p['bq'][0]).reshape(B, L, H, E)
    k = (x @ p['wk'].T + p['bk'][0]).reshape(B, L, H, E)
    v = (x @ p['wv'].T + p['bv'][0]).reshape(B, L, H, E)
    sig = x @ p['wsig'].T + p['bsig'][0]                       # (B, L, H)

    scores = jnp.einsum('blhe,bshe->bhls', q, k)
    attn = scores / math.sqrt(E)
    series = jax.nn.softmax(attn, axis=-1)

    sigt = jnp.transpose(sig, (0, 2, 1))                       # (B, H, L)
    sigt = jax.nn.sigmoid(sigt * 5.0) + 1e-5
    sigt = jnp.exp(sigt * math.log(3.0)) - 1.0
    sigma = jnp.broadcast_to(sigt[..., None], (B, H, L, L))
    prior = (1.0 / (math.sqrt(2 * math.pi) * sigma)) * jnp.exp(
        -(dist ** 2) / 2.0 / (sigma ** 2))

    V = jnp.einsum('bhls,bshd->blhd', series, v).reshape(B, L, H * E)
    new_x = V @ p['wo'].T + p['bo'][0]

    xr = x + new_x
    xn = _layernorm_ref(xr, p['n1g'][0], p['n1b'][0])
    y = jnp.maximum(xn @ p['w1'].T + p['b1'][0], 0.0)
    y = y @ p['w2'].T + p['b2'][0]
    out = _layernorm_ref(xn + y, p['n2g'][0], p['n2b'][0])
    return out, series, prior, sigma


def encoder_forward_ref(x, dist, layer_params, final_norm):
    series_list, prior_list, sigma_list = [], [], []
    for p in layer_params:
        x, series, prior, sigma = encoder_layer_ref(x, dist, p)
        series_list.append(series)
        prior_list.append(prior)
        sigma_list.append(sigma)
    x = _layernorm_ref(x, final_norm['g'][0], final_norm['b'][0])
    return x, series_list, prior_list, sigma_list


# -----------------------------------------------------------------------------
# Deterministic parameter init (PyTorch layout: Linear weights are (out, in))
# -----------------------------------------------------------------------------
def init_layer_params(key, d_model, n_heads, d_ff):
    ks = jax.random.split(key, 14)
    s = 0.1
    f32 = jnp.float32
    return {
        'wq': jax.random.normal(ks[0], (d_model, d_model), f32) * s,
        'bq': jax.random.normal(ks[1], (1, d_model), f32) * s,
        'wk': jax.random.normal(ks[2], (d_model, d_model), f32) * s,
        'bk': jax.random.normal(ks[3], (1, d_model), f32) * s,
        'wv': jax.random.normal(ks[4], (d_model, d_model), f32) * s,
        'bv': jax.random.normal(ks[5], (1, d_model), f32) * s,
        'wsig': jax.random.normal(ks[6], (n_heads, d_model), f32) * s,
        'bsig': jax.random.normal(ks[7], (1, n_heads), f32) * s,
        'wo': jax.random.normal(ks[8], (d_model, d_model), f32) * s,
        'bo': jax.random.normal(ks[9], (1, d_model), f32) * s,
        'n1g': jnp.ones((1, d_model), f32),
        'n1b': jnp.zeros((1, d_model), f32),
        'n2g': jnp.ones((1, d_model), f32),
        'n2b': jnp.zeros((1, d_model), f32),
        'w1': jax.random.normal(ks[10], (d_ff, d_model), f32) * s,   # conv1 (1x1)
        'b1': jax.random.normal(ks[11], (1, d_ff), f32) * s,
        'w2': jax.random.normal(ks[12], (d_model, d_ff), f32) * s,   # conv2 (1x1)
        'b2': jax.random.normal(ks[13], (1, d_model), f32) * s,
    }


if __name__ == "__main__":
    B, L, d_model, n_heads, n_layers = 2, 16, 32, 4, 2
    d_ff = 4 * d_model

    key = jax.random.PRNGKey(0)
    kx, *layer_keys = jax.random.split(key, 1 + n_layers)

    x = jax.random.normal(kx, (B, L, d_model), jnp.float32)
    # distances[i, j] = |i - j|  (AnomalyAttention.distances)
    idx = jnp.arange(L, dtype=jnp.float32)
    dist = jnp.abs(idx[:, None] - idx[None, :])

    layer_params = [init_layer_params(k, d_model, n_heads, d_ff) for k in layer_keys]
    final_norm = {'g': jnp.ones((1, d_model), jnp.float32),
                  'b': jnp.zeros((1, d_model), jnp.float32)}

    ref = encoder_forward_ref(x, dist, layer_params, final_norm)

    # --- f32-matmul path: strict correctness check against the reference --------
    prep_f32 = prep_encoder_params(layer_params, final_norm, jnp.float32)
    out = jax.block_until_ready(encoder_forward_pallas(x, dist, prep_f32))
    x_out, series_list, prior_list, sigma_list = out

    np.testing.assert_allclose(np.asarray(x_out), np.asarray(ref[0]),
                               rtol=1e-3, atol=1e-4)
    for li in range(n_layers):
        np.testing.assert_allclose(np.asarray(series_list[li]), np.asarray(ref[1][li]),
                                   rtol=1e-3, atol=1e-5)
        np.testing.assert_allclose(np.asarray(prior_list[li]), np.asarray(ref[2][li]),
                                   rtol=1e-3, atol=1e-5)
        np.testing.assert_allclose(np.asarray(sigma_list[li]), np.asarray(ref[3][li]),
                                   rtol=1e-3, atol=1e-5)

    # --- bf16-matmul fast path (v6e/v7x MXU): loose sanity check -----------------
    prep_bf16 = prep_encoder_params(layer_params, final_norm, jnp.bfloat16)
    out_bf = jax.block_until_ready(encoder_forward_pallas(x, dist, prep_bf16))
    np.testing.assert_allclose(np.asarray(out_bf[0]), np.asarray(ref[0]),
                               rtol=8e-2, atol=8e-2)

    print("KERNEL_OK")
</pallas_src>

<mosaic_0001>
module attributes {stable_mosaic.version = 11 : i64} {
  func.func @_encoder_kernel(%arg0: i32, %arg1: i32, %arg2: memref<1x16x32xf32, #tpu.memory_space<vmem>>, %arg3: memref<16x16xf32, #tpu.memory_space<vmem>>, %arg4: memref<1x32x100xf32, #tpu.memory_space<vmem>>, %arg5: memref<1x1x100xf32, #tpu.memory_space<vmem>>, %arg6: memref<1x32x32xf32, #tpu.memory_space<vmem>>, %arg7: memref<1x1x32xf32, #tpu.memory_space<vmem>>, %arg8: memref<1x32x128xf32, #tpu.memory_space<vmem>>, %arg9: memref<1x1x128xf32, #tpu.memory_space<vmem>>, %arg10: memref<1x128x32xf32, #tpu.memory_space<vmem>>, %arg11: memref<1x1x32xf32, #tpu.memory_space<vmem>>, %arg12: memref<1x4x32xf32, #tpu.memory_space<vmem>>, %arg13: memref<1x32xf32, #tpu.memory_space<vmem>>, %arg14: memref<1x32xf32, #tpu.memory_space<vmem>>, %arg15: memref<1x16x32xf32, #tpu.memory_space<vmem>>, %arg16: memref<1x1x4x16x16xf32, #tpu.memory_space<vmem>>, %arg17: memref<1x1x4x16x16xf32, #tpu.memory_space<vmem>>, %arg18: memref<1x1x16x4xf32, #tpu.memory_space<vmem>>, %arg19: memref<16x32xf32, #tpu.memory_space<vmem>>) attributes {dimension_semantics = [#tpu.dimension_semantics<parallel>, #tpu.dimension_semantics<arbitrary>], iteration_bounds = array<i64: 2, 2>, scalar_prefetch = 0 : i64, scratch_operands = 1 : i64, tpu.core_type = #tpu.core_type<tc>, window_params = [{transform_indices = @transform_0, window_bounds = array<i64: 1, 16, 32>}, {pipeline_mode = #tpu.pipeline_mode<synchronous>, transform_indices = @transform_1, window_bounds = array<i64: 16, 16>}, {transform_indices = @transform_2, window_bounds = array<i64: 1, 32, 100>}, {transform_indices = @transform_3, window_bounds = array<i64: 1, 1, 100>}, {transform_indices = @transform_4, window_bounds = array<i64: 1, 32, 32>}, {transform_indices = @transform_5, window_bounds = array<i64: 1, 1, 32>}, {transform_indices = @transform_6, window_bounds = array<i64: 1, 32, 128>}, {transform_indices = @transform_7, window_bounds = array<i64: 1, 1, 128>}, {transform_indices = @transform_8, window_bounds = array<i64: 1, 128, 32>}, {transform_indices = @transform_9, window_bounds = array<i64: 1, 1, 32>}, {transform_indices = @transform_10, window_bounds = array<i64: 1, 4, 32>}, {pipeline_mode = #tpu.pipeline_mode<synchronous>, transform_indices = @transform_11, window_bounds = array<i64: 1, 32>}, {pipeline_mode = #tpu.pipeline_mode<synchronous>, transform_indices = @transform_12, window_bounds = array<i64: 1, 32>}, {transform_indices = @transform_13, window_bounds = array<i64: 1, 16, 32>}, {transform_indices = @transform_14, window_bounds = array<i64: 1, 1, 4, 16, 16>}, {transform_indices = @transform_15, window_bounds = array<i64: 1, 1, 4, 16, 16>}, {transform_indices = @transform_16, window_bounds = array<i64: 1, 1, 16, 4>}]} {
    %c0_i32 = arith.constant 0 : i32
    %0 = arith.cmpi eq, %arg1, %c0_i32 : i32
    %1 = arith.extui %0 : i1 to i32
    %c0_i32_0 = arith.constant 0 : i32
    %2 = arith.cmpi ne, %1, %c0_i32_0 : i32
    scf.if %2 {
      %c0_134 = arith.constant 0 : index
      %c0_135 = arith.constant 0 : index
      %c0_136 = arith.constant 0 : index
      %268 = vector.load %arg2[%c0_134, %c0_135, %c0_136] : memref<1x16x32xf32, #tpu.memory_space<vmem>>, vector<1x16x32xf32>
      %c0_137 = arith.constant 0 : index
      %c0_138 = arith.constant 0 : index
      %c0_139 = arith.constant 0 : index
      %269 = vector.load %arg15[%c0_137, %c0_138, %c0_139] : memref<1x16x32xf32, #tpu.memory_space<vmem>>, vector<1x16x32xf32>
      tpu.vector_store %arg15[%c0_137, %c0_138, %c0_139], %268 {strides = array<i32>} : memref<1x16x32xf32, #tpu.memory_space<vmem>>, vector<1x16x32xf32>,
    } else {
    }
    %c0 = arith.constant 0 : index
    %c0_1 = arith.constant 0 : index
    %c0_2 = arith.constant 0 : index
    %3 = vector.load %arg15[%c0, %c0_1, %c0_2] : memref<1x16x32xf32, #tpu.memory_space<vmem>>, vector<1x16x32xf32>
    %4 = vector.shape_cast %3 : vector<1x16x32xf32> to vector<16x32xf32>
    %c0_3 = arith.constant 0 : index
    %c0_4 = arith.constant 0 : index
    %5 = vector.load %arg3[%c0_3, %c0_4] : memref<16x16xf32, #tpu.memory_space<vmem>>, vector<16x16xf32>
    %c0_5 = arith.constant 0 : index
    %c0_6 = arith.constant 0 : index
    %c0_7 = arith.constant 0 : index
    %6 = vector.load %arg4[%c0_5, %c0_6, %c0_7] : memref<1x32x100xf32, #tpu.memory_space<vmem>>, vector<1x32x100xf32>
    %7 = vector.shape_cast %6 : vector<1x32x100xf32> to vector<32x100xf32>
    %cst = arith.constant dense<0.000000e+00> : vector<16x100xf32>
    %8 = tpu.matmul %4, %7, %cst {dimension_numbers = #tpu.dot_dimension_numbers<[1], [0], [0], [1], [0, 0, 1, 1], [], []>} : vector<16x32xf32>, vector<32x100xf32>, vector<16x100xf32> -> vector<16x100xf32>
    %c0_8 = arith.constant 0 : index
    %c0_9 = arith.constant 0 : index
    %c0_10 = arith.constant 0 : index
    %9 = vector.load %arg5[%c0_8, %c0_9, %c0_10] : memref<1x1x100xf32, #tpu.memory_space<vmem>>, vector<1x1x100xf32>
    %10 = vector.shape_cast %9 : vector<1x1x100xf32> to vector<1x100xf32>
    %11 = vector.broadcast %10 : vector<1x100xf32> to vector<16x100xf32>
    %12 = arith.addf %8, %11 : vector<16x100xf32>
    %13 = vector.extract_strided_slice %12 {offsets = [0, 0], sizes = [16, 32], strides = [1, 1]} : vector<16x100xf32> to vector<16x32xf32>
    %14 = vector.extract_strided_slice %12 {offsets = [0, 32], sizes = [16, 32], strides = [1, 1]} : vector<16x100xf32> to vector<16x32xf32>
    %15 = vector.extract_strided_slice %12 {offsets = [0, 64], sizes = [16, 32], strides = [1, 1]} : vector<16x100xf32> to vector<16x32xf32>
    %16 = vector.extract_strided_slice %12 {offsets = [0, 96], sizes = [16, 4], strides = [1, 1]} : vector<16x100xf32> to vector<16x4xf32>
    %cst_11 = arith.constant 5.000000e+00 : f32
    %17 = vector.broadcast %cst_11 : f32 to vector<16x4xf32>
    %18 = arith.mulf %16, %17 : vector<16x4xf32>
    %19 = arith.negf %18 : vector<16x4xf32>
    %20 = math.exp %19 : vector<16x4xf32>
    %cst_12 = arith.constant 1.000000e+00 : f32
    %21 = vector.broadcast %cst_12 : f32 to vector<16x4xf32>
    %22 = arith.addf %21, %20 : vector<16x4xf32>
    %23 = arith.divf %21, %22 : vector<16x4xf32>
    %cst_13 = arith.constant 9.99999974E-6 : f32
    %24 = vector.broadcast %cst_13 : f32 to vector<16x4xf32>
    %25 = arith.addf %23, %24 : vector<16x4xf32>
    %cst_14 = arith.constant 1.09861231 : f32
    %26 = vector.broadcast %cst_14 : f32 to vector<16x4xf32>
    %27 = arith.mulf %25, %26 : vector<16x4xf32>
    %28 = math.exp %27 : vector<16x4xf32>
    %cst_15 = arith.constant 1.000000e+00 : f32
    %29 = vector.broadcast %cst_15 : f32 to vector<16x4xf32>
    %30 = arith.subf %28, %29 : vector<16x4xf32>
    %c0_16 = arith.constant 0 : index
    %c0_17 = arith.constant 0 : index
    %c0_18 = arith.constant 0 : index
    %c0_19 = arith.constant 0 : index
    %31 = vector.load %arg18[%c0_16, %c0_17, %c0_18, %c0_19] : memref<1x1x16x4xf32, #tpu.memory_space<vmem>>, vector<1x1x16x4xf32>
    %32 = vector.shape_cast %31 : vector<1x1x16x4xf32> to vector<16x4xf32>
    %33 = vector.shape_cast %30 : vector<16x4xf32> to vector<1x1x16x4xf32>
    tpu.vector_store %arg18[%c0_16, %c0_17, %c0_18, %c0_19], %33 {strides = array<i32>} : memref<1x1x16x4xf32, #tpu.memory_space<vmem>>, vector<1x1x16x4xf32>,
    %34 = vector.extract_strided_slice %13 {offsets = [0, 0], sizes = [16, 8], strides = [1, 1]} : vector<16x32xf32> to vector<16x8xf32>
    %35 = vector.extract_strided_slice %14 {offsets = [0, 0], sizes = [16, 8], strides = [1, 1]} : vector<16x32xf32> to vector<16x8xf32>
    %36 = vector.extract_strided_slice %15 {offsets = [0, 0], sizes = [16, 8], strides = [1, 1]} : vector<16x32xf32> to vector<16x8xf32>
    %cst_20 = arith.constant dense<0.000000e+00> : vector<16x16xf32>
    %37 = tpu.matmul %34, %35, %cst_20 {dimension_numbers = #tpu.dot_dimension_numbers<[1], [1], [0], [0], [0, 0, 1, 0], [], []>} : vector<16x8xf32>, vector<16x8xf32>, vector<16x16xf32> -> vector<16x16xf32>
    %cst_21 = arith.constant 0.353553385 : f32
    %38 = vector.broadcast %cst_21 : f32 to vector<16x16xf32>
    %39 = arith.mulf %37, %38 : vector<16x16xf32>
    %cst_22 = arith.constant dense<0xFF800000> : vector<16xf32>
    %40 = vector.multi_reduction <maximumf>, %39, %cst_22 [1] : vector<16x16xf32> to vector<16xf32>
    %41 = vector.shape_cast %40 : vector<16xf32> to vector<16x1xf32>
    %42 = vector.broadcast %41 : vector<16x1xf32> to vector<16x16xf32>
    %43 = arith.subf %39, %42 : vector<16x16xf32>
    %44 = math.exp %43 : vector<16x16xf32>
    %cst_23 = arith.constant dense<0.000000e+00> : vector<16xf32>
    %45 = vector.multi_reduction <add>, %44, %cst_23 [1] : vector<16x16xf32> to vector<16xf32>
    %46 = vector.shape_cast %45 : vector<16xf32> to vector<16x1xf32>
    %cst_24 = arith.constant 1.000000e+00 : f32
    %47 = vector.broadcast %cst_24 : f32 to vector<16x1xf32>
    %48 = arith.divf %47, %46 : vector<16x1xf32>
    %49 = vector.broadcast %48 : vector<16x1xf32> to vector<16x16xf32>
    %50 = arith.mulf %44, %49 : vector<16x16xf32>
    %c0_25 = arith.constant 0 : index
    %c0_26 = arith.constant 0 : index
    %c0_27 = arith.constant 0 : index
    %c0_28 = arith.constant 0 : index
    %c0_29 = arith.constant 0 : index
    %51 = vector.load %arg16[%c0_25, %c0_26, %c0_27, %c0_28, %c0_29] : memref<1x1x4x16x16xf32, #tpu.memory_space<vmem>>, vector<1x1x1x16x16xf32>
    %52 = vector.shape_cast %51 : vector<1x1x1x16x16xf32> to vector<16x16xf32>
    %53 = vector.shape_cast %50 : vector<16x16xf32> to vector<1x1x1x16x16xf32>
    tpu.vector_store %arg16[%c0_25, %c0_26, %c0_27, %c0_28, %c0_29], %53 {strides = array<i32>} : memref<1x1x4x16x16xf32, #tpu.memory_space<vmem>>, vector<1x1x1x16x16xf32>,
    %54 = vector.extract_strided_slice %30 {offsets = [0, 0], sizes = [16, 1], strides = [1, 1]} : vector<16x4xf32> to vector<16x1xf32>
    %cst_30 = arith.constant 1.000000e+00 : f32
    %55 = vector.broadcast %cst_30 : f32 to vector<16x1xf32>
    %56 = arith.divf %55, %54 : vector<16x1xf32>
    %cst_31 = arith.constant 0.398942292 : f32
    %57 = vector.broadcast %cst_31 : f32 to vector<16x1xf32>
    %58 = arith.mulf %56, %57 : vector<16x1xf32>
    %59 = arith.mulf %56, %56 : vector<16x1xf32>
    %60 = vector.broadcast %59 : vector<16x1xf32> to vector<16x16xf32>
    %61 = arith.mulf %5, %60 : vector<16x16xf32>
    %62 = math.exp %61 : vector<16x16xf32>
    %63 = vector.broadcast %58 : vector<16x1xf32> to vector<16x16xf32>
    %64 = arith.mulf %63, %62 : vector<16x16xf32>
    %c0_32 = arith.constant 0 : index
    %c0_33 = arith.constant 0 : index
    %c0_34 = arith.constant 0 : index
    %c0_35 = arith.constant 0 : index
    %c0_36 = arith.constant 0 : index
    %65 = vector.load %arg17[%c0_32, %c0_33, %c0_34, %c0_35, %c0_36] : memref<1x1x4x16x16xf32, #tpu.memory_space<vmem>>, vector<1x1x1x16x16xf32>
    %66 = vector.shape_cast %65 : vector<1x1x1x16x16xf32> to vector<16x16xf32>
    %67 = vector.shape_cast %64 : vector<16x16xf32> to vector<1x1x1x16x16xf32>
    tpu.vector_store %arg17[%c0_32, %c0_33, %c0_34, %c0_35, %c0_36], %67 {strides = array<i32>} : memref<1x1x4x16x16xf32, #tpu.memory_space<vmem>>, vector<1x1x1x16x16xf32>,
    %cst_37 = arith.constant dense<0.000000e+00> : vector<16x8xf32>
    %68 = tpu.matmul %50, %36, %cst_37 {dimension_numbers = #tpu.dot_dimension_numbers<[1], [0], [0], [1], [0, 0, 1, 1], [], []>} : vector<16x16xf32>, vector<16x8xf32>, vector<16x8xf32> -> vector<16x8xf32>
    %c0_38 = arith.constant 0 : index
    %c0_39 = arith.constant 0 : index
    %69 = vector.load %arg19[%c0_38, %c0_39] : memref<16x32xf32, #tpu.memory_space<vmem>>, vector<16x8xf32>
    tpu.vector_store %arg19[%c0_38, %c0_39], %68 {strides = array<i32>} : memref<16x32xf32, #tpu.memory_space<vmem>>, vector<16x8xf32>,
    %70 = vector.extract_strided_slice %13 {offsets = [0, 8], sizes = [16, 8], strides = [1, 1]} : vector<16x32xf32> to vector<16x8xf32>
    %71 = vector.extract_strided_slice %14 {offsets = [0, 8], sizes = [16, 8], strides = [1, 1]} : vector<16x32xf32> to vector<16x8xf32>
    %72 = vector.extract_strided_slice %15 {offsets = [0, 8], sizes = [16, 8], strides = [1, 1]} : vector<16x32xf32> to vector<16x8xf32>
    %cst_40 = arith.constant dense<0.000000e+00> : vector<16x16xf32>
    %73 = tpu.matmul %70, %71, %cst_40 {dimension_numbers = #tpu.dot_dimension_numbers<[1], [1], [0], [0], [0, 0, 1, 0], [], []>} : vector<16x8xf32>, vector<16x8xf32>, vector<16x16xf32> -> vector<16x16xf32>
    %cst_41 = arith.constant 0.353553385 : f32
    %74 = vector.broadcast %cst_41 : f32 to vector<16x16xf32>
    %75 = arith.mulf %73, %74 : vector<16x16xf32>
    %cst_42 = arith.constant dense<0xFF800000> : vector<16xf32>
    %76 = vector.multi_reduction <maximumf>, %75, %cst_42 [1] : vector<16x16xf32> to vector<16xf32>
    %77 = vector.shape_cast %76 : vector<16xf32> to vector<16x1xf32>
    %78 = vector.broadcast %77 : vector<16x1xf32> to vector<16x16xf32>
    %79 = arith.subf %75, %78 : vector<16x16xf32>
    %80 = math.exp %79 : vector<16x16xf32>
    %cst_43 = arith.constant dense<0.000000e+00> : vector<16xf32>
    %81 = vector.multi_reduction <add>, %80, %cst_43 [1] : vector<16x16xf32> to vector<16xf32>
    %82 = vector.shape_cast %81 : vector<16xf32> to vector<16x1xf32>
    %cst_44 = arith.constant 1.000000e+00 : f32
    %83 = vector.broadcast %cst_44 : f32 to vector<16x1xf32>
    %84 = arith.divf %83, %82 : vector<16x1xf32>
    %85 = vector.broadcast %84 : vector<16x1xf32> to vector<16x16xf32>
    %86 = arith.mulf %80, %85 : vector<16x16xf32>
    %c0_45 = arith.constant 0 : index
    %c0_46 = arith.constant 0 : index
    %c1 = arith.constant 1 : index
    %c0_47 = arith.constant 0 : index
    %c0_48 = arith.constant 0 : index
    %87 = vector.load %arg16[%c0_45, %c0_46, %c1, %c0_47, %c0_48] : memref<1x1x4x16x16xf32, #tpu.memory_space<vmem>>, vector<1x1x1x16x16xf32>
    %88 = vector.shape_cast %87 : vector<1x1x1x16x16xf32> to vector<16x16xf32>
    %89 = vector.shape_cast %86 : vector<16x16xf32> to vector<1x1x1x16x16xf32>
    tpu.vector_store %arg16[%c0_45, %c0_46, %c1, %c0_47, %c0_48], %89 {strides = array<i32>} : memref<1x1x4x16x16xf32, #tpu.memory_space<vmem>>, vector<1x1x1x16x16xf32>,
    %90 = vector.extract_strided_slice %30 {offsets = [0, 1], sizes = [16, 1], strides = [1, 1]} : vector<16x4xf32> to vector<16x1xf32>
    %cst_49 = arith.constant 1.000000e+00 : f32
    %91 = vector.broadcast %cst_49 : f32 to vector<16x1xf32>
    %92 = arith.divf %91, %90 : vector<16x1xf32>
    %cst_50 = arith.constant 0.398942292 : f32
    %93 = vector.broadcast %cst_50 : f32 to vector<16x1xf32>
    %94 = arith.mulf %92, %93 : vector<16x1xf32>
    %95 = arith.mulf %92, %92 : vector<16x1xf32>
    %96 = vector.broadcast %95 : vector<16x1xf32> to vector<16x16xf32>
    %97 = arith.mulf %5, %96 : vector<16x16xf32>
    %98 = math.exp %97 : vector<16x16xf32>
    %99 = vector.broadcast %94 : vector<16x1xf32> to vector<16x16xf32>
    %100 = arith.mulf %99, %98 : vector<16x16xf32>
    %c0_51 = arith.constant 0 : index
    %c0_52 = arith.constant 0 : index
    %c1_53 = arith.constant 1 : index
    %c0_54 = arith.constant 0 : index
    %c0_55 = arith.constant 0 : index
    %101 = vector.load %arg17[%c0_51, %c0_52, %c1_53, %c0_54, %c0_55] : memref<1x1x4x16x16xf32, #tpu.memory_space<vmem>>, vector<1x1x1x16x16xf32>
    %102 = vector.shape_cast %101 : vector<1x1x1x16x16xf32> to vector<16x16xf32>
    %103 = vector.shape_cast %100 : vector<16x16xf32> to vector<1x1x1x16x16xf32>
    tpu.vector_store %arg17[%c0_51, %c0_52, %c1_53, %c0_54, %c0_55], %103 {strides = array<i32>} : memref<1x1x4x16x16xf32, #tpu.memory_space<vmem>>, vector<1x1x1x16x16xf32>,
    %cst_56 = arith.constant dense<0.000000e+00> : vector<16x8xf32>
    %104 = tpu.matmul %86, %72, %cst_56 {dimension_numbers = #tpu.dot_dimension_numbers<[1], [0], [0], [1], [0, 0, 1, 1], [], []>} : vector<16x16xf32>, vector<16x8xf32>, vector<16x8xf32> -> vector<16x8xf32>
    %c0_57 = arith.constant 0 : index
    %c8 = arith.constant 8 : index
    %105 = vector.load %arg19[%c0_57, %c8] : memref<16x32xf32, #tpu.memory_space<vmem>>, vector<16x8xf32>
    tpu.vector_store %arg19[%c0_57, %c8], %104 {strides = array<i32>} : memref<16x32xf32, #tpu.memory_space<vmem>>, vector<16x8xf32>,
    %106 = vector.extract_strided_slice %13 {offsets = [0, 16], sizes = [16, 8], strides = [1, 1]} : vector<16x32xf32> to vector<16x8xf32>
    %107 = vector.extract_strided_slice %14 {offsets = [0, 16], sizes = [16, 8], strides = [1, 1]} : vector<16x32xf32> to vector<16x8xf32>
    %108 = vector.extract_strided_slice %15 {offsets = [0, 16], sizes = [16, 8], strides = [1, 1]} : vector<16x32xf32> to vector<16x8xf32>
    %cst_58 = arith.constant dense<0.000000e+00> : vector<16x16xf32>
    %109 = tpu.matmul %106, %107, %cst_58 {dimension_numbers = #tpu.dot_dimension_numbers<[1], [1], [0], [0], [0, 0, 1, 0], [], []>} : vector<16x8xf32>, vector<16x8xf32>, vector<16x16xf32> -> vector<16x16xf32>
    %cst_59 = arith.constant 0.353553385 : f32
    %110 = vector.broadcast %cst_59 : f32 to vector<16x16xf32>
    %111 = arith.mulf %109, %110 : vector<16x16xf32>
    %cst_60 = arith.constant dense<0xFF800000> : vector<16xf32>
    %112 = vector.multi_reduction <maximumf>, %111, %cst_60 [1] : vector<16x16xf32> to vector<16xf32>
    %113 = vector.shape_cast %112 : vector<16xf32> to vector<16x1xf32>
    %114 = vector.broadcast %113 : vector<16x1xf32> to vector<16x16xf32>
    %115 = arith.subf %111, %114 : vector<16x16xf32>
    %116 = math.exp %115 : vector<16x16xf32>
    %cst_61 = arith.constant dense<0.000000e+00> : vector<16xf32>
    %117 = vector.multi_reduction <add>, %116, %cst_61 [1] : vector<16x16xf32> to vector<16xf32>
    %118 = vector.shape_cast %117 : vector<16xf32> to vector<16x1xf32>
    %cst_62 = arith.constant 1.000000e+00 : f32
    %119 = vector.broadcast %cst_62 : f32 to vector<16x1xf32>
    %120 = arith.divf %119, %118 : vector<16x1xf32>
    %121 = vector.broadcast %120 : vector<16x1xf32> to vector<16x16xf32>
    %122 = arith.mulf %116, %121 : vector<16x16xf32>
    %c0_63 = arith.constant 0 : index
    %c0_64 = arith.constant 0 : index
    %c2 = arith.constant 2 : index
    %c0_65 = arith.constant 0 : index
    %c0_66 = arith.constant 0 : index
    %123 = vector.load %arg16[%c0_63, %c0_64, %c2, %c0_65, %c0_66] : memref<1x1x4x16x16xf32, #tpu.memory_space<vmem>>, vector<1x1x1x16x16xf32>
    %124 = vector.shape_cast %123 : vector<1x1x1x16x16xf32> to vector<16x16xf32>
    %125 = vector.shape_cast %122 : vector<16x16xf32> to vector<1x1x1x16x16xf32>
    tpu.vector_store %arg16[%c0_63, %c0_64, %c2, %c0_65, %c0_66], %125 {strides = array<i32>} : memref<1x1x4x16x16xf32, #tpu.memory_space<vmem>>, vector<1x1x1x16x16xf32>,
    %126 = vector.extract_strided_slice %30 {offsets = [0, 2], sizes = [16, 1], strides = [1, 1]} : vector<16x4xf32> to vector<16x1xf32>
    %cst_67 = arith.constant 1.000000e+00 : f32
    %127 = vector.broadcast %cst_67 : f32 to vector<16x1xf32>
    %128 = arith.divf %127, %126 : vector<16x1xf32>
    %cst_68 = arith.constant 0.398942292 : f32
    %129 = vector.broadcast %cst_68 : f32 to vector<16x1xf32>
    %130 = arith.mulf %128, %129 : vector<16x1xf32>
    %131 = arith.mulf %128, %128 : vector<16x1xf32>
    %132 = vector.broadcast %131 : vector<16x1xf32> to vector<16x16xf32>
    %133 = arith.mulf %5, %132 : vector<16x16xf32>
    %134 = math.exp %133 : vector<16x16xf32>
    %135 = vector.broadcast %130 : vector<16x1xf32> to vector<16x16xf32>
    %136 = arith.mulf %135, %134 : vector<16x16xf32>
    %c0_69 = arith.constant 0 : index
    %c0_70 = arith.constant 0 : index
    %c2_71 = arith.constant 2 : index
    %c0_72 = arith.constant 0 : index
    %c0_73 = arith.constant 0 : index
    %137 = vector.load %arg17[%c0_69, %c0_70, %c2_71, %c0_72, %c0_73] : memref<1x1x4x16x16xf32, #tpu.memory_space<vmem>>, vector<1x1x1x16x16xf32>
    %138 = vector.shape_cast %137 : vector<1x1x1x16x16xf32> to vector<16x16xf32>
    %139 = vector.shape_cast %136 : vector<16x16xf32> to vector<1x1x1x16x16xf32>
    tpu.vector_store %arg17[%c0_69, %c0_70, %c2_71, %c0_72, %c0_73], %139 {strides = array<i32>} : memref<1x1x4x16x16xf32, #tpu.memory_space<vmem>>, vector<1x1x1x16x16xf32>,
    %cst_74 = arith.constant dense<0.000000e+00> : vector<16x8xf32>
    %140 = tpu.matmul %122, %108, %cst_74 {dimension_numbers = #tpu.dot_dimension_numbers<[1], [0], [0], [1], [0, 0, 1, 1], [], []>} : vector<16x16xf32>, vector<16x8xf32>, vector<16x8xf32> -> vector<16x8xf32>
    %c0_75 = arith.constant 0 : index
    %c16 = arith.constant 16 : index
    %141 = vector.load %arg19[%c0_75, %c16] : memref<16x32xf32, #tpu.memory_space<vmem>>, vector<16x8xf32>
    tpu.vector_store %arg19[%c0_75, %c16], %140 {strides = array<i32>} : memref<16x32xf32, #tpu.memory_space<vmem>>, vector<16x8xf32>,
    %142 = vector.extract_strided_slice %13 {offsets = [0, 24], sizes = [16, 8], strides = [1, 1]} : vector<16x32xf32> to vector<16x8xf32>
    %143 = vector.extract_strided_slice %14 {offsets = [0, 24], sizes = [16, 8], strides = [1, 1]} : vector<16x32xf32> to vector<16x8xf32>
    %144 = vector.extract_strided_slice %15 {offsets = [0, 24], sizes = [16, 8], strides = [1, 1]} : vector<16x32xf32> to vector<16x8xf32>
    %cst_76 = arith.constant dense<0.000000e+00> : vector<16x16xf32>
    %145 = tpu.matmul %142, %143, %cst_76 {dimension_numbers = #tpu.dot_dimension_numbers<[1], [1], [0], [0], [0, 0, 1, 0], [], []>} : vector<16x8xf32>, vector<16x8xf32>, vector<16x16xf32> -> vector<16x16xf32>
    %cst_77 = arith.constant 0.353553385 : f32
    %146 = vector.broadcast %cst_77 : f32 to vector<16x16xf32>
    %147 = arith.mulf %145, %146 : vector<16x16xf32>
    %cst_78 = arith.constant dense<0xFF800000> : vector<16xf32>
    %148 = vector.multi_reduction <maximumf>, %147, %cst_78 [1] : vector<16x16xf32> to vector<16xf32>
    %149 = vector.shape_cast %148 : vector<16xf32> to vector<16x1xf32>
    %150 = vector.broadcast %149 : vector<16x1xf32> to vector<16x16xf32>
    %151 = arith.subf %147, %150 : vector<16x16xf32>
    %152 = math.exp %151 : vector<16x16xf32>
    %cst_79 = arith.constant dense<0.000000e+00> : vector<16xf32>
    %153 = vector.multi_reduction <add>, %152, %cst_79 [1] : vector<16x16xf32> to vector<16xf32>
    %154 = vector.shape_cast %153 : vector<16xf32> to vector<16x1xf32>
    %cst_80 = arith.constant 1.000000e+00 : f32
    %155 = vector.broadcast %cst_80 : f32 to vector<16x1xf32>
    %156 = arith.divf %155, %154 : vector<16x1xf32>
    %157 = vector.broadcast %156 : vector<16x1xf32> to vector<16x16xf32>
    %158 = arith.mulf %152, %157 : vector<16x16xf32>
    %c0_81 = arith.constant 0 : index
    %c0_82 = arith.constant 0 : index
    %c3 = arith.constant 3 : index
    %c0_83 = arith.constant 0 : index
    %c0_84 = arith.constant 0 : index
    %159 = vector.load %arg16[%c0_81, %c0_82, %c3, %c0_83, %c0_84] : memref<1x1x4x16x16xf32, #tpu.memory_space<vmem>>, vector<1x1x1x16x16xf32>
    %160 = vector.shape_cast %159 : vector<1x1x1x16x16xf32> to vector<16x16xf32>
    %161 = vector.shape_cast %158 : vector<16x16xf32> to vector<1x1x1x16x16xf32>
    tpu.vector_store %arg16[%c0_81, %c0_82, %c3, %c0_83, %c0_84], %161 {strides = array<i32>} : memref<1x1x4x16x16xf32, #tpu.memory_space<vmem>>, vector<1x1x1x16x16xf32>,
    %162 = vector.extract_strided_slice %30 {offsets = [0, 3], sizes = [16, 1], strides = [1, 1]} : vector<16x4xf32> to vector<16x1xf32>
    %cst_85 = arith.constant 1.000000e+00 : f32
    %163 = vector.broadcast %cst_85 : f32 to vector<16x1xf32>
    %164 = arith.divf %163, %162 : vector<16x1xf32>
    %cst_86 = arith.constant 0.398942292 : f32
    %165 = vector.broadcast %cst_86 : f32 to vector<16x1xf32>
    %166 = arith.mulf %164, %165 : vector<16x1xf32>
    %167 = arith.mulf %164, %164 : vector<16x1xf32>
    %168 = vector.broadcast %167 : vector<16x1xf32> to vector<16x16xf32>
    %169 = arith.mulf %5, %168 : vector<16x16xf32>
    %170 = math.exp %169 : vector<16x16xf32>
    %171 = vector.broadcast %166 : vector<16x1xf32> to vector<16x16xf32>
    %172 = arith.mulf %171, %170 : vector<16x16xf32>
    %c0_87 = arith.constant 0 : index
    %c0_88 = arith.constant 0 : index
    %c3_89 = arith.constant 3 : index
    %c0_90 = arith.constant 0 : index
    %c0_91 = arith.constant 0 : index
    %173 = vector.load %arg17[%c0_87, %c0_88, %c3_89, %c0_90, %c0_91] : memref<1x1x4x16x16xf32, #tpu.memory_space<vmem>>, vector<1x1x1x16x16xf32>
    %174 = vector.shape_cast %173 : vector<1x1x1x16x16xf32> to vector<16x16xf32>
    %175 = vector.shape_cast %172 : vector<16x16xf32> to vector<1x1x1x16x16xf32>
    tpu.vector_store %arg17[%c0_87, %c0_88, %c3_89, %c0_90, %c0_91], %175 {strides = array<i32>} : memref<1x1x4x16x16xf32, #tpu.memory_space<vmem>>, vector<1x1x1x16x16xf32>,
    %cst_92 = arith.constant dense<0.000000e+00> : vector<16x8xf32>
    %176 = tpu.matmul %158, %144, %cst_92 {dimension_numbers = #tpu.dot_dimension_numbers<[1], [0], [0], [1], [0, 0, 1, 1], [], []>} : vector<16x16xf32>, vector<16x8xf32>, vector<16x8xf32> -> vector<16x8xf32>
    %c0_93 = arith.constant 0 : index
    %c24 = arith.constant 24 : index
    %177 = vector.load %arg19[%c0_93, %c24] : memref<16x32xf32, #tpu.memory_space<vmem>>, vector<16x8xf32>
    tpu.vector_store %arg19[%c0_93, %c24], %176 {strides = array<i32>} : memref<16x32xf32, #tpu.memory_space<vmem>>, vector<16x8xf32>,
    %c0_94 = arith.constant 0 : index
    %c0_95 = arith.constant 0 : index
    %178 = vector.load %arg19[%c0_94, %c0_95] : memref<16x32xf32, #tpu.memory_space<vmem>>, vector<16x32xf32>
    %c0_96 = arith.constant 0 : index
    %c0_97 = arith.constant 0 : index
    %c0_98 = arith.constant 0 : index
    %179 = vector.load %arg6[%c0_96, %c0_97, %c0_98] : memref<1x32x32xf32, #tpu.memory_space<vmem>>, vector<1x32x32xf32>
    %180 = vector.shape_cast %179 : vector<1x32x32xf32> to vector<32x32xf32>
    %cst_99 = arith.constant dense<0.000000e+00> : vector<16x32xf32>
    %181 = tpu.matmul %178, %180, %cst_99 {dimension_numbers = #tpu.dot_dimension_numbers<[1], [0], [0], [1], [0, 0, 1, 1], [], []>} : vector<16x32xf32>, vector<32x32xf32>, vector<16x32xf32> -> vector<16x32xf32>
    %c0_100 = arith.constant 0 : index
    %c0_101 = arith.constant 0 : index
    %c0_102 = arith.constant 0 : index
    %182 = vector.load %arg7[%c0_100, %c0_101, %c0_102] : memref<1x1x32xf32, #tpu.memory_space<vmem>>, vector<1x1x32xf32>
    %183 = vector.shape_cast %182 : vector<1x1x32xf32> to vector<1x32xf32>
    %184 = vector.broadcast %183 : vector<1x32xf32> to vector<16x32xf32>
    %185 = arith.addf %181, %184 : vector<16x32xf32>
    %c0_103 = arith.constant 0 : index
    %c0_104 = arith.constant 0 : index
    %c0_105 = arith.constant 0 : index
    %186 = vector.load %arg12[%c0_103, %c0_104, %c0_105] : memref<1x4x32xf32, #tpu.memory_space<vmem>>, vector<1x4x32xf32>
    %187 = vector.shape_cast %186 : vector<1x4x32xf32> to vector<4x32xf32>
    %188 = arith.addf %4, %185 : vector<16x32xf32>
    %189 = vector.extract_strided_slice %187 {offsets = [0, 0], sizes = [1, 32], strides = [1, 1]} : vector<4x32xf32> to vector<1x32xf32>
    %190 = vector.shape_cast %189 : vector<1x32xf32> to vector<32xf32>
    %191 = vector.extract_strided_slice %187 {offsets = [1, 0], sizes = [1, 32], strides = [1, 1]} : vector<4x32xf32> to vector<1x32xf32>
    %192 = vector.shape_cast %191 : vector<1x32xf32> to vector<32xf32>
    %cst_106 = arith.constant dense<0.000000e+00> : vector<16xf32>
    %193 = vector.multi_reduction <add>, %188, %cst_106 [1] : vector<16x32xf32> to vector<16xf32>
    %194 = vector.shape_cast %193 : vector<16xf32> to vector<16x1xf32>
    %cst_107 = arith.constant 3.200000e+01 : f32
    %195 = vector.broadcast %cst_107 : f32 to vector<16x1xf32>
    %196 = arith.divf %194, %195 : vector<16x1xf32>
    %197 = vector.broadcast %196 : vector<16x1xf32> to vector<16x32xf32>
    %198 = arith.subf %188, %197 : vector<16x32xf32>
    %199 = arith.mulf %198, %198 : vector<16x32xf32>
    %cst_108 = arith.constant dense<0.000000e+00> : vector<16xf32>
    %200 = vector.multi_reduction <add>, %199, %cst_108 [1] : vector<16x32xf32> to vector<16xf32>
    %201 = vector.shape_cast %200 : vector<16xf32> to vector<16x1xf32>
    %cst_109 = arith.constant 3.200000e+01 : f32
    %202 = vector.broadcast %cst_109 : f32 to vector<16x1xf32>
    %203 = arith.divf %201, %202 : vector<16x1xf32>
    %204 = vector.broadcast %196 : vector<16x1xf32> to vector<16x32xf32>
    %205 = arith.subf %188, %204 : vector<16x32xf32>
    %cst_110 = arith.constant 9.99999974E-6 : f32
    %206 = vector.broadcast %cst_110 : f32 to vector<16x1xf32>
    %207 = arith.addf %203, %206 : vector<16x1xf32>
    %208 = math.rsqrt %207 : vector<16x1xf32>
    %209 = vector.broadcast %208 : vector<16x1xf32> to vector<16x32xf32>
    %210 = arith.mulf %205, %209 : vector<16x32xf32>
    %211 = vector.shape_cast %190 : vector<32xf32> to vector<1x32xf32>
    %212 = vector.broadcast %211 : vector<1x32xf32> to vector<16x32xf32>
    %213 = arith.mulf %210, %212 : vector<16x32xf32>
    %214 = vector.shape_cast %192 : vector<32xf32> to vector<1x32xf32>
    %215 = vector.broadcast %214 : vector<1x32xf32> to vector<16x32xf32>
    %216 = arith.addf %213, %215 : vector<16x32xf32>
    %c0_111 = arith.constant 0 : index
    %c0_112 = arith.constant 0 : index
    %c0_113 = arith.constant 0 : index
    %217 = vector.load %arg8[%c0_111, %c0_112, %c0_113] : memref<1x32x128xf32, #tpu.memory_space<vmem>>, vector<1x32x128xf32>
    %218 = vector.shape_cast %217 : vector<1x32x128xf32> to vector<32x128xf32>
    %cst_114 = arith.constant dense<0.000000e+00> : vector<16x128xf32>
    %219 = tpu.matmul %216, %218, %cst_114 {dimension_numbers = #tpu.dot_dimension_numbers<[1], [0], [0], [1], [0, 0, 1, 1], [], []>} : vector<16x32xf32>, vector<32x128xf32>, vector<16x128xf32> -> vector<16x128xf32>
    %c0_115 = arith.constant 0 : index
    %c0_116 = arith.constant 0 : index
    %c0_117 = arith.constant 0 : index
    %220 = vector.load %arg9[%c0_115, %c0_116, %c0_117] : memref<1x1x128xf32, #tpu.memory_space<vmem>>, vector<1x1x128xf32>
    %221 = vector.shape_cast %220 : vector<1x1x128xf32> to vector<1x128xf32>
    %222 = vector.broadcast %221 : vector<1x128xf32> to vector<16x128xf32>
    %223 = arith.addf %219, %222 : vector<16x128xf32>
    %cst_118 = arith.constant 0.000000e+00 : f32
    %224 = vector.broadcast %cst_118 : f32 to vector<16x128xf32>
    %225 = arith.maximumf %223, %224 : vector<16x128xf32>
    %c0_119 = arith.constant 0 : index
    %c0_120 = arith.constant 0 : index
    %c0_121 = arith.constant 0 : index
    %226 = vector.load %arg10[%c0_119, %c0_120, %c0_121] : memref<1x128x32xf32, #tpu.memory_space<vmem>>, vector<1x128x32xf32>
    %227 = vector.shape_cast %226 : vector<1x128x32xf32> to vector<128x32xf32>
    %cst_122 = arith.constant dense<0.000000e+00> : vector<16x32xf32>
    %228 = tpu.matmul %225, %227, %cst_122 {dimension_numbers = #tpu.dot_dimension_numbers<[1], [0], [0], [1], [0, 0, 1, 1], [], []>} : vector<16x128xf32>, vector<128x32xf32>, vector<16x32xf32> -> vector<16x32xf32>
    %c0_123 = arith.constant 0 : index
    %c0_124 = arith.constant 0 : index
    %c0_125 = arith.constant 0 : index
    %229 = vector.load %arg11[%c0_123, %c0_124, %c0_125] : memref<1x1x32xf32, #tpu.memory_space<vmem>>, vector<1x1x32xf32>
    %230 = vector.shape_cast %229 : vector<1x1x32xf32> to vector<1x32xf32>
    %231 = vector.broadcast %230 : vector<1x32xf32> to vector<16x32xf32>
    %232 = arith.addf %228, %231 : vector<16x32xf32>
    %233 = arith.addf %216, %232 : vector<16x32xf32>
    %234 = vector.extract_strided_slice %187 {offsets = [2, 0], sizes = [1, 32], strides = [1, 1]} : vector<4x32xf32> to vector<1x32xf32>
    %235 = vector.shape_cast %234 : vector<1x32xf32> to vector<32xf32>
    %236 = vector.extract_strided_slice %187 {offsets = [3, 0], sizes = [1, 32], strides = [1, 1]} : vector<4x32xf32> to vector<1x32xf32>
    %237 = vector.shape_cast %236 : vector<1x32xf32> to vector<32xf32>
    %cst_126 = arith.constant dense<0.000000e+00> : vector<16xf32>
    %238 = vector.multi_reduction <add>, %233, %cst_126 [1] : vector<16x32xf32> to vector<16xf32>
    %239 = vector.shape_cast %238 : vector<16xf32> to vector<16x1xf32>
    %cst_127 = arith.constant 3.200000e+01 : f32
    %240 = vector.broadcast %cst_127 : f32 to vector<16x1xf32>
    %241 = arith.divf %239, %240 : vector<16x1xf32>
    %242 = vector.broadcast %241 : vector<16x1xf32> to vector<16x32xf32>
    %243 = arith.subf %233, %242 : vector<16x32xf32>
    %244 = arith.mulf %243, %243 : vector<16x32xf32>
    %cst_128 = arith.constant dense<0.000000e+00> : vector<16xf32>
    %245 = vector.multi_reduction <add>, %244, %cst_128 [1] : vector<16x32xf32> to vector<16xf32>
    %246 = vector.shape_cast %245 : vector<16xf32> to vector<16x1xf32>
    %cst_129 = arith.constant 3.200000e+01 : f32
    %247 = vector.broadcast %cst_129 : f32 to vector<16x1xf32>
    %248 = arith.divf %246, %247 : vector<16x1xf32>
    %249 = vector.broadcast %241 : vector<16x1xf32> to vector<16x32xf32>
    %250 = arith.subf %233, %249 : vector<16x32xf32>
    %cst_130 = arith.constant 9.99999974E-6 : f32
    %251 = vector.broadcast %cst_130 : f32 to vector<16x1xf32>
    %252 = arith.addf %248, %251 : vector<16x1xf32>
    %253 = math.rsqrt %252 : vector<16x1xf32>
    %254 = vector.broadcast %253 : vector<16x1xf32> to vector<16x32xf32>
    %255 = arith.mulf %250, %254 : vector<16x32xf32>
    %256 = vector.shape_cast %235 : vector<32xf32> to vector<1x32xf32>
    %257 = vector.broadcast %256 : vector<1x32xf32> to vector<16x32xf32>
    %258 = arith.mulf %255, %257 : vector<16x32xf32>
    %259 = vector.shape_cast %237 : vector<32xf32> to vector<1x32xf32>
    %260 = vector.broadcast %259 : vector<1x32xf32> to vector<16x32xf32>
    %261 = arith.addf %258, %260 : vector<16x32xf32>
    %c1_i32 = arith.constant 1 : i32
    %262 = arith.cmpi eq, %arg1, %c1_i32 : i32
    %263 = arith.extui %262 : i1 to i32
    %c0_i32_131 = arith.constant 0 : i32
    %264 = arith.cmpi ne, %263, %c0_i32_131 : i32
    scf.if %264 {
      %c0_134 = arith.constant 0 : index
      %c0_135 = arith.constant 0 : index
      %268 = vector.load %arg13[%c0_134, %c0_135] : memref<1x32xf32, #tpu.memory_space<vmem>>, vector<1x32xf32>
      %c0_136 = arith.constant 0 : index
      %c0_137 = arith.constant 0 : index
      %269 = vector.load %arg14[%c0_136, %c0_137] : memref<1x32xf32, #tpu.memory_space<vmem>>, vector<1x32xf32>
      %cst_138 = arith.constant dense<0.000000e+00> : vector<16xf32>
      %270 = vector.multi_reduction <add>, %261, %cst_138 [1] : vector<16x32xf32> to vector<16xf32>
      %271 = vector.shape_cast %270 : vector<16xf32> to vector<16x1xf32>
      %cst_139 = arith.constant 3.200000e+01 : f32
      %272 = vector.broadcast %cst_139 : f32 to vector<16x1xf32>
      %273 = arith.divf %271, %272 : vector<16x1xf32>
      %274 = vector.broadcast %273 : vector<16x1xf32> to vector<16x32xf32>
      %275 = arith.subf %261, %274 : vector<16x32xf32>
      %276 = arith.mulf %275, %275 : vector<16x32xf32>
      %cst_140 = arith.constant dense<0.000000e+00> : vector<16xf32>
      %277 = vector.multi_reduction <add>, %276, %cst_140 [1] : vector<16x32xf32> to vector<16xf32>
      %278 = vector.shape_cast %277 : vector<16xf32> to vector<16x1xf32>
      %cst_141 = arith.constant 3.200000e+01 : f32
      %279 = vector.broadcast %cst_141 : f32 to vector<16x1xf32>
      %280 = arith.divf %278, %279 : vector<16x1xf32>
      %281 = vector.broadcast %273 : vector<16x1xf32> to vector<16x32xf32>
      %282 = arith.subf %261, %281 : vector<16x32xf32>
      %cst_142 = arith.constant 9.99999974E-6 : f32
      %283 = vector.broadcast %cst_142 : f32 to vector<16x1xf32>
      %284 = arith.addf %280, %283 : vector<16x1xf32>
      %285 = math.rsqrt %284 : vector<16x1xf32>
      %286 = vector.broadcast %285 : vector<16x1xf32> to vector<16x32xf32>
      %287 = arith.mulf %282, %286 : vector<16x32xf32>
      %288 = vector.broadcast %268 : vector<1x32xf32> to vector<16x32xf32>
      %289 = arith.mulf %287, %288 : vector<16x32xf32>
      %290 = vector.broadcast %269 : vector<1x32xf32> to vector<16x32xf32>
      %291 = arith.addf %289, %290 : vector<16x32xf32>
      %c0_143 = arith.constant 0 : index
      %c0_144 = arith.constant 0 : index
      %c0_145 = arith.constant 0 : index
      %292 = vector.load %arg15[%c0_143, %c0_144, %c0_145] : memref<1x16x32xf32, #tpu.memory_space<vmem>>, vector<1x16x32xf32>
      %293 = vector.shape_cast %292 : vector<1x16x32xf32> to vector<16x32xf32>
      %294 = vector.shape_cast %291 : vector<16x32xf32> to vector<1x16x32xf32>
      tpu.vector_store %arg15[%c0_143, %c0_144, %c0_145], %294 {strides = array<i32>} : memref<1x16x32xf32, #tpu.memory_space<vmem>>, vector<1x16x32xf32>,
    } else {
    }
    %c1_i32_132 = arith.constant 1 : i32
    %265 = arith.cmpi slt, %arg1, %c1_i32_132 : i32
    %266 = arith.extui %265 : i1 to i32
    %c0_i32_133 = arith.constant 0 : i32
    %267 = arith.cmpi ne, %266, %c0_i32_133 : i32
    scf.if %267 {
      %c0_134 = arith.constant 0 : index
      %c0_135 = arith.constant 0 : index
      %c0_136 = arith.constant 0 : index
      %268 = vector.load %arg15[%c0_134, %c0_135, %c0_136] : memref<1x16x32xf32, #tpu.memory_space<vmem>>, vector<1x16x32xf32>
      %269 = vector.shape_cast %268 : vector<1x16x32xf32> to vector<16x32xf32>
      %270 = vector.shape_cast %261 : vector<16x32xf32> to vector<1x16x32xf32>
      tpu.vector_store %arg15[%c0_134, %c0_135, %c0_136], %270 {strides = array<i32>} : memref<1x16x32xf32, #tpu.memory_space<vmem>>, vector<1x16x32xf32>,
    } else {
    }
    return
  }
  func.func @transform_0(%arg0: i32, %arg1: i32) -> (i32, i32, i32) {
    %c0_i32 = arith.constant 0 : i32
    %c0_i32_0 = arith.constant 0 : i32
    %c0_i32_1 = arith.constant 0 : i32
    return %arg0, %c0_i32, %c0_i32_0 : i32, i32, i32
  }
  func.func @transform_1(%arg0: i32, %arg1: i32) -> (i32, i32) {
    %c0_i32 = arith.constant 0 : i32
    %c0_i32_0 = arith.constant 0 : i32
    %c0_i32_1 = arith.constant 0 : i32
    return %c0_i32, %c0_i32_0 : i32, i32
  }
  func.func @transform_2(%arg0: i32, %arg1: i32) -> (i32, i32, i32) {
    %c0_i32 = arith.constant 0 : i32
    %c0_i32_0 = arith.constant 0 : i32
    %c0_i32_1 = arith.constant 0 : i32
    return %arg1, %c0_i32, %c0_i32_0 : i32, i32, i32
  }
  func.func @transform_3(%arg0: i32, %arg1: i32) -> (i32, i32, i32) {
    %c0_i32 = arith.constant 0 : i32
    %c0_i32_0 = arith.constant 0 : i32
    %c0_i32_1 = arith.constant 0 : i32
    return %arg1, %c0_i32, %c0_i32_0 : i32, i32, i32
  }
  func.func @transform_4(%arg0: i32, %arg1: i32) -> (i32, i32, i32) {
    %c0_i32 = arith.constant 0 : i32
    %c0_i32_0 = arith.constant 0 : i32
    %c0_i32_1 = arith.constant 0 : i32
    return %arg1, %c0_i32, %c0_i32_0 : i32, i32, i32
  }
  func.func @transform_5(%arg0: i32, %arg1: i32) -> (i32, i32, i32) {
    %c0_i32 = arith.constant 0 : i32
    %c0_i32_0 = arith.constant 0 : i32
    %c0_i32_1 = arith.constant 0 : i32
    return %arg1, %c0_i32, %c0_i32_0 : i32, i32, i32
  }
  func.func @transform_6(%arg0: i32, %arg1: i32) -> (i32, i32, i32) {
    %c0_i32 = arith.constant 0 : i32
    %c0_i32_0 = arith.constant 0 : i32
    %c0_i32_1 = arith.constant 0 : i32
    return %arg1, %c0_i32, %c0_i32_0 : i32, i32, i32
  }
  func.func @transform_7(%arg0: i32, %arg1: i32) -> (i32, i32, i32) {
    %c0_i32 = arith.constant 0 : i32
    %c0_i32_0 = arith.constant 0 : i32
    %c0_i32_1 = arith.constant 0 : i32
    return %arg1, %c0_i32, %c0_i32_0 : i32, i32, i32
  }
  func.func @transform_8(%arg0: i32, %arg1: i32) -> (i32, i32, i32) {
    %c0_i32 = arith.constant 0 : i32
    %c0_i32_0 = arith.constant 0 : i32
    %c0_i32_1 = arith.constant 0 : i32
    return %arg1, %c0_i32, %c0_i32_0 : i32, i32, i32
  }
  func.func @transform_9(%arg0: i32, %arg1: i32) -> (i32, i32, i32) {
    %c0_i32 = arith.constant 0 : i32
    %c0_i32_0 = arith.constant 0 : i32
    %c0_i32_1 = arith.constant 0 : i32
    return %arg1, %c0_i32, %c0_i32_0 : i32, i32, i32
  }
  func.func @transform_10(%arg0: i32, %arg1: i32) -> (i32, i32, i32) {
    %c0_i32 = arith.constant 0 : i32
    %c0_i32_0 = arith.constant 0 : i32
    %c0_i32_1 = arith.constant 0 : i32
    return %arg1, %c0_i32, %c0_i32_0 : i32, i32, i32
  }
  func.func @transform_11(%arg0: i32, %arg1: i32) -> (i32, i32) {
    %c0_i32 = arith.constant 0 : i32
    %c0_i32_0 = arith.constant 0 : i32
    %c0_i32_1 = arith.constant 0 : i32
    return %c0_i32, %c0_i32_0 : i32, i32
  }
  func.func @transform_12(%arg0: i32, %arg1: i32) -> (i32, i32) {
    %c0_i32 = arith.constant 0 : i32
    %c0_i32_0 = arith.constant 0 : i32
    %c0_i32_1 = arith.constant 0 : i32
    return %c0_i32, %c0_i32_0 : i32, i32
  }
  func.func @transform_13(%arg0: i32, %arg1: i32) -> (i32, i32, i32) {
    %c0_i32 = arith.constant 0 : i32
    %c0_i32_0 = arith.constant 0 : i32
    %c0_i32_1 = arith.constant 0 : i32
    return %arg0, %c0_i32, %c0_i32_0 : i32, i32, i32
  }
  func.func @transform_14(%arg0: i32, %arg1: i32) -> (i32, i32, i32, i32, i32) {
    %c0_i32 = arith.constant 0 : i32
    %c0_i32_0 = arith.constant 0 : i32
    %c0_i32_1 = arith.constant 0 : i32
    %c0_i32_2 = arith.constant 0 : i32
    return %arg1, %arg0, %c0_i32, %c0_i32_0, %c0_i32_1 : i32, i32, i32, i32, i32
  }
  func.func @transform_15(%arg0: i32, %arg1: i32) -> (i32, i32, i32, i32, i32) {
    %c0_i32 = arith.constant 0 : i32
    %c0_i32_0 = arith.constant 0 : i32
    %c0_i32_1 = arith.constant 0 : i32
    %c0_i32_2 = arith.constant 0 : i32
    return %arg1, %arg0, %c0_i32, %c0_i32_0, %c0_i32_1 : i32, i32, i32, i32, i32
  }
  func.func @transform_16(%arg0: i32, %arg1: i32) -> (i32, i32, i32, i32) {
    %c0_i32 = arith.constant 0 : i32
    %c0_i32_0 = arith.constant 0 : i32
    %c0_i32_1 = arith.constant 0 : i32
    return %arg1, %arg0, %c0_i32, %c0_i32_0 : i32, i32, i32, i32
  }
}

</mosaic_0001>

<bundles_post_ra>
// kernel: tpu_custom_call.1
= control target key start
LH: loop header
LB: loop body
LE: loop exit
PB: predicated region body
PF: predicated region fallthrough
CT: control target
= control target key end

     0   :  { %s3460_s0 = inlined_call_operand.vmem [shape: f32[2,16,32], index: 0, kind: input, shape index: {}]   ;;  %s3461_s1 = inlined_call_operand.vmem [shape: f32[16,16], index: 1, kind: input, shape index: {}]   ;;  %s3462_s2 = inlined_call_operand.vmem [shape: f32[2,32,100], index: 2, kind: input, shape index: {}]   ;;  %s3463_s3 = inlined_call_operand.vmem [shape: f32[2,1,100], index: 3, kind: input, shape index: {}]   ;;  %s3464_s4 = inlined_call_operand.vmem [shape: f32[2,32,32], index: 4, kind: input, shape index: {}]   ;;  %s3465_s5 = inlined_call_operand.vmem [shape: f32[2,1,32], index: 5, kind: input, shape index: {}]   ;;  %s3466_s6 = inlined_call_operand.vmem [shape: f32[2,32,128], index: 6, kind: input, shape index: {}]   ;;  %s3467_s7 = inlined_call_operand.vmem [shape: f32[2,1,128], index: 7, kind: input, shape index: {}]   ;;  %s3468_s8 = inlined_call_operand.vmem [shape: f32[2,128,32], index: 8, kind: input, shape index: {}]   ;;  %s3469_s9 = inlined_call_operand.vmem [shape: f32[2,1,32], index: 9, kind: input, shape index: {}]   ;;  %s3470_s10 = inlined_call_operand.vmem [shape: f32[2,4,32], index: 10, kind: input, shape index: {}]   ;;  %s3471_s11 = inlined_call_operand.vmem [shape: f32[1,32], index: 11, kind: input, shape index: {}]   ;;  %s3472_s12 = inlined_call_operand.vmem [shape: f32[1,32], index: 12, kind: input, shape index: {}]   ;;  %s3473_s13 = inlined_call_operand.hbm [shape: f32[2,16,32], index: 13, kind: output, shape index: {0}]   ;;  %s3474_s14 = inlined_call_operand.hbm [shape: f32[2,2,4,16,16], index: 14, kind: output, shape index: {1}]   ;;  %s3475_s15 = inlined_call_operand.hbm [shape: f32[2,2,4,16,16], index: 15, kind: output, shape index: {2}]   ;;  %s3476_s16 = inlined_call_operand.vmem [shape: f32[2,2,16,4], index: 16, kind: output, shape index: {3}]  }
   0x1   :  { %3506 = sst [smem:[#allocation28_spill]] %s3460_s0 }
   0x2   :  { %3507 = sst [smem:[#allocation29_spill]] %s3461_s1 }
   0x3   :  { %3508 = sst [smem:[#allocation30_spill]] %s3462_s2 }
   0x4   :  { %3509 = sst [smem:[#allocation31_spill]] %s3463_s3 }
   0x5   :  { %3510 = sst [smem:[#allocation32_spill]] %s3464_s4 }
   0x6   :  { %3511 = sst [smem:[#allocation33_spill]] %s3465_s5 }
   0x7   :  { %3512 = sst [smem:[#allocation34_spill]] %s3466_s6 }
   0x8   :  { %3513 = sst [smem:[#allocation35_spill]] %s3471_s11 }
   0x9   :  { %3514 = sst [smem:[#allocation36_spill]] %s3472_s12 }
   0xa   :  { %3515 = sst [smem:[#allocation37_spill]] %s3473_s13 }
   0xb   :  { %3516 = sst [smem:[#allocation38_spill]] %s3474_s14 }
   0xc   :  { %3517 = sst [smem:[#allocation39_spill]] %s3475_s15 }
   0xd   :  { %3518 = sst [smem:[#allocation40_spill]] %s3476_s16 }
   0xe   :  { %22 = vsyncpa [#allocation4], 0 }
   0xf   :  { %24 = vsyncpa [#allocation4 + $0x1], 0 }
  0x10   :  { %25 = vsyncpa [#allocation6], 0 }
  0x11   :  { %27 = vsyncpa [#allocation6 + $0x1], 0  ;;  %s2811_s21 = smov 0   ;;  %s2813_s22 = smov 0  }
  0x12   :  { %s2815_s23 = smov 0   ;;  %s2817_s24 = smov 0  }
  0x13   :  { %s2819_s25 = smov 0   ;;  %s2821_s26 = smov 0  }
  0x14   :  { %s2823_s27 = smov 0   ;;  %s2825_s28 = smov 0  }
  0x15   :  { %s2827_s29 = smov 0   ;;  %s2829_s30 = smov 0  }
  0x16   :  { %s2831_s0 = smov 0  }
  0x17 LB: > { %3519 = sst [smem:[#allocation10_spill]] %s2667_s22  ;;  %s3480_s17 = sadd.s32 4294967295, %s2703_s0   ;;  %s2703_s0 = sphi %s2831_s0, %s33_s0   ;;  %s2699_s30 = sphi %s2829_s30, %s3588_s30   ;;  %s2695_s29 = sphi %s2827_s29, %s3587_s29   ;;  %s2691_s28 = sphi %s2825_s28, %s3586_s28   ;;  %s2687_s27 = sphi %s2823_s27, %s3585_s27   ;;  %s2683_s26 = sphi %s2821_s26, %s3584_s26   ;;  %s2679_s25 = sphi %s2819_s25, %s3583_s25   ;;  %s2675_s24 = sphi %s2817_s24, %s3582_s24   ;;  %s2671_s23 = sphi %s2815_s23, %s3581_s23   ;;  %s2667_s22 = sphi %s2813_s22, %s3580_s22   ;;  %s2663_s21 = sphi %s2811_s21, %s3579_s21  }
  0x18   : > { %3520 = sst [smem:[#allocation11_spill]] %s2671_s23  ;;  %s42_s19 = sadd.s32 1, %s2695_s29 }
  0x19   : > { %3521 = sst [smem:[#allocation12_spill]] %s2675_s24  ;;  %s45_s20 = sadd.s32 1, %s2699_s30 }
  0x1a   : > { %3522 = sst [smem:[#allocation13_spill]] %s2679_s25  ;;  %p43_p0 = scmp.ge.s32.totalorder %s42_s19, 2 }
  0x1b   : > { %3523 = sst [smem:[#allocation14_spill]] %s2683_s26  ;;  %s375_s13 = sadd.s32 1, %s2683_s26 }
  0x1c   : > { %3524 = sst [smem:[#allocation15_spill]] %s2687_s27  ;;  %p385_p1 = scmp.ne.s32.totalorder %s2683_s26, %s2679_s25 }
  0x1d   : > { %3525 = sst [smem:[#allocation16_spill]] %s2691_s28  ;;  %p2875_p2 = scmp.eq.s32.totalorder %s3480_s17, 3 }
  0x1e   : > { %3526 = sst [smem:[#allocation17_spill]] %s2695_s29  ;;  %s3590_s19 = smov (%p43_p0, %s42_s19), 0 }
  0x1f   : > { %3527 = sst [smem:[#allocation18_spill]] %s2699_s30  ;;  %s3592_s20 = smov (!%p43_p0, %s45_s20), %s2699_s30 }
  0x20   : > { %3528 = sst [smem:[#allocation19_spill]] %s2703_s0  ;;  %p2884_p3 = por %p2875_p2, %p385_p1 }
  0x21   : > { %3530 = sst [smem:[#allocation20_spill]] %s3590_s19  ;;  %p391_p4 = scmp.ne.s32.totalorder %s2679_s25, %s2675_s24 }
  0x22   : > { %s3531_s18 = scalar_select %p2884_p3, 1, 0 }
  0x23   : > { %p47_p5 = scmp.ge.s32.totalorder %s3592_s20, 2  ;;  %s3533_s14 = sadd.s32 4294967294, %s2703_s0  }
  0x24   : > { %3532 = sst [smem:[#allocation21_spill]] %s3531_s18  ;;  %p2892_p6 = scmp.eq.s32.totalorder %s3533_s14, 3 }
  0x25   : > { %s398_s12 = ssub.s32 %s2695_s29, %s3590_s19  ;;  %s403_s11 = sadd.s32 1, %s2671_s23 }
  0x26   : > { %s3594_s20 = smov (%p47_p5, %s3592_s20), 0  ;;  %p2903_p7 = por %p2892_p6, %p391_p4 }
  0x27   : > { %3535 = sst [smem:[#allocation22_spill]] %s3594_s20  ;;  %p413_p8 = scmp.ne.s32.totalorder %s2671_s23, %s2667_s22 }
  0x28   : > { %s3536_s18 = scalar_select %p2903_p7, 1, 0 }
  0x29   : > { %s372_s24 = ssub.s32 %s2699_s30, %s3594_s20  ;;  %p419_p9 = scmp.ne.s32.totalorder %s2667_s22, %s2663_s21 }
  0x2a   : > { %3537 = sst [smem:[#allocation23_spill]] %s3536_s18  ;;  %p373_p10 = scmp.eq.s32.totalorder %s372_s24, 0 }
  0x2b   : > { %s400_s14 = sor.u32 %s398_s12, %s372_s24  ;;  %p2915_p12 = por %p413_p8, %p2875_p2 }
  0x2c   : > { %p401_p11 = scmp.eq.s32.totalorder %s400_s14, 0  ;;  %p2927_p13 = por %p419_p9, %p2892_p6 }
  0x2d   : > { %s3538_s1 = scalar_select %p2915_p12, 1, 0 }
  0x2e   : > { %s2920_s19 = scalar_select %p373_p10, %s2683_s26, %s375_s13  }
  0x2f   : > { %3539 = sst [smem:[#allocation24_spill]] %s3538_s1  ;;  %p2196_p0 = scmp.ge.s32.totalorder %s2703_s0, 1 }
  0x30   : > { %3540 = sst [smem:[#allocation25_spill]] %s2920_s19  ;;  %p574_p1 = scmp.lt.s32.totalorder %s2703_s0, 5 }
  0x31   : > { %s2923_s29 = scalar_select %p401_p11, %s2671_s23, %s403_s11  }
  0x32   : > { %s3542_s16 = scalar_select %p2927_p13, 1, 0 }
  0x33   : > { %3541 = sst [smem:[#allocation26_spill]] %s2923_s29  ;;  %p575_p4 = pnand %p2196_p0, %p574_p1 }
  0x34   : > { %3543 = sst [smem:[#allocation27_spill]] %s3542_s16  ;;  %s3490_s12 = sand.u32 (!%p575_p4), 1, %s2679_s25  }
  0x35   : > { %578 = sbr.rel (%p575_p4) target bundleno = 2729 (0xaa9), region = 72  ;;  %s658_s13 = sand.u32 (!%p575_p4), 1, %s2667_s22  }
  0x36   : > { %s2197_s11 = sshll.u32 (!%p575_p4), %s3490_s12, 4  ;;  %s2198_s15 = sshll.u32 (!%p575_p4), %s658_s13, 6 }
  0x37   : > { %p679_p2 = scmp.lt.s32.totalorder (!%p575_p4), %s2691_s28, 1  ;;  %p684_p5 = scmp.lt.s32.totalorder (!%p575_p4), %s2687_s27, 1 }
  0x38   : > { %s3544_s19 = sld [smem:[#allocation28_spill]] (!%p575_p4)  ;;  %s2993_s18 = scalar_lea.vmem (!%p575_p4), [#allocation3], %s2197_s11 }
  0x39   : > { %s3545_s2 = sld [smem:[#allocation30_spill]] (!%p575_p4)  ;;  %s2995_s22 = scalar_lea.vmem (!%p575_p4), [#allocation5], %s2198_s15 }
  0x3a   : > { %s680_s21 = scalar_select %p679_p2, %s2691_s28, 1 }
  0x3b   : > { %s2941_s24 = scalar_select %p684_p5, %s2687_s27, 1 }
  0x3c   : > { %s2276_s17 = sshll.u32 %s680_s21, 4  ;;  %s2211_s14 = sshll.u32 %s680_s21, 1 }
  0x3d   : > { %s2277_s12 = sshll.u32 %s2941_s24, 5  ;;  %s3547_s4 = sld [smem:[#allocation32_spill]] }
  0x3e   : > { %s683_s26 = scalar_lea.vmem %s3544_s19, %s2276_s17  ;;  %s3549_s6 = sld [smem:[#allocation34_spill]] }
  0x3f   : > { %s688_s23 = scalar_lea.vmem %s3545_s2, %s2277_s12  ;;  %s2280_s16 = sshll.u32 %s2941_s24, 7 }
  0x40   : > { %s715_s1 = scalar_lea.vmem %s3469_s9, %s2941_s24  ;;  %s2210_s0 = sshll.u32 %s2941_s24, 2 }
  0x41   : > { %s726_s30 = sadd.s32 %s2211_s14, %s2210_s0  ;;  %s3550_s13 = sld [smem:[#allocation40_spill]] }
  0x42   : > { %s2213_s19 = sshll.u32 %s726_s30, 3  ;;  %s2997_s2 = scalar_lea.vmem [#allocation7], %s2198_s15 }
  0x43   : > { %s2957_s28 = scalar_lea.vmem %s3547_s4, %s2277_s12  ;;  %s2980_s4 = scalar_lea.vmem %s3468_s8, %s2280_s16 }
  0x44   : > { %s2966_s20 = scalar_lea.vmem %s3549_s6, %s2277_s12  ;;  %s2986_s12 = scalar_lea.vmem %s3470_s10, %s2210_s0 }
  0x45   : > { %s3551_s16 = sld [smem:[#allocation15_spill]] }
  0x47   : > { %s2991_s6 = scalar_lea.vmem %s3550_s13, %s2213_s19 }
  0x4b   : > { %p2214_p6 = scmp.ne.s32.totalorder %s3551_s16, 0 }
  0x4d   : > { %732 = sbr.rel (%p2214_p6) target bundleno = 85 (0x55), region = 76 }
  0x52   : > { %v733_v0 = vld [vmem:[%s683_s26] sm:$0xff]  ;;  %vm735_vm0 = vcmask 261120   ;;  %v734_v1 = vld [vmem:[%s683_s26 + $0x8] sm:$0xff] }
  0x53   : > { %736 = vst.msk [vmem:[%s2993_s18] sm:$0xff] %vm735_vm0, %v733_v0 }
  0x54   : > { %737 = vst.msk [vmem:[%s2993_s18 + $0x8] sm:$0xff] %vm735_vm0, %v734_v1 }
  0x55 PF: > { %v745_v2 = vld [vmem:[%s688_s23 + $0x18] sm:$0xff]  ;;  %v744_v3 = vld [vmem:[%s688_s23 + $0x10] sm:$0xff]  ;;  %v743_v4 = vld [vmem:[%s688_s23 + $0x8] sm:$0xff]  ;;  %vm750_vm1 = vcmask 261120   ;;  %s3552_s3 = sld [smem:[#allocation31_spill]]  ;;  %s2706_s15 = smov 96  }
  0x56   : > { %769 = vmatpush.msra.mxu0 %v745_v2  ;;  %v742_v5 = vld [vmem:[%s688_s23] sm:$0xff]  ;;  %s2705_s23 = smov 88   ;;  %s2707_s14 = smov 64   ;;  %vm847_vm2 = vcmask 64512   ;;  %vm881_vm3 = vcmask 130048  }
  0x57   : > { %s2708_s13 = smov 120   ;;  %s2709_s25 = smov 72  }
  0x58   : > { %770 = vmatpush.msra.mxu0 %v744_v3  ;;  %s2710_s0 = smov 80   ;;  %s2711_s21 = smov 112  }
  0x59   : > { %s2712_s30 = smov 104   ;;  %s2713_s19 = smov 40  }
  0x5a   : > { %771 = vmatpush.msra.mxu0 %v743_v4  ;;  %v3003_v6 = vld [vmem:[%s2993_s18] sm:$0xff]  ;;  %s2714_s29 = smov 56   ;;  %s2715_s17 = smov 48  }
  0x5b   : > { %v3008_v7 = vld [vmem:[%s2993_s18 + $0x8] sm:$0xff]  ;;  %s3553_s11 = scalar_lea.vmem %s3552_s3, %s2941_s24  ;;  %s2716_s16 = smov 16  }
  0x5c   : > { %772 = vmatpush.msra.mxu0 %v742_v5  ;;  %v2441_v8 = vld [vmem:[%s3553_s11] ss:$0 sm:$0xff]  ;;  %s3503_s26 = smov 8   ;;  %s2718_s27 = smov 24  }
  0x5d   : > { %2215 = vmatmul.msk.f32.vlgmr.msra.gmra.mxu0 %vm750_vm1, %v3003_v6  ;;  %s3554_s5 = sld [smem:[#allocation33_spill]] }
  0x65   : > { %2216 = vmatmul.msk.f32.gmra.mxu0 %vm750_vm1, %v3008_v7 }
  0xda   : > { %v774_v9 = vpop.f32.mrf.mxu0 }
  0xdb   : > { %v3017_v10 = vadd.f32 %v2441_v8, %v774_v9 }
  0xdd   : > { %1039 = vrot.lane.b32.xlu2 %v3017_v10, %s2705_s23 }
  0xe2   : > { %v777_v11 = vpop.f32.mrf.mxu0 }
  0xe3   : > { %v3021_v12 = vadd.f32 %v2441_v8, %v777_v11 }
  0xe5   : > { %845 = vrot.lane.b32.xlu0 %v3021_v12, %s2706_s15  ;;  %v3027_v13 = vpack.i.bf16 %v3017_v10, %v3021_v12 }
  0xed   : > { %843 = vrot.lane.b32.xlu0 %v3017_v10, %s2706_s15  ;;  %s2720_s15 = smov 32  }
  0xf5   : > { %2411 = vrot.lane.b32.xlu0 %v3027_v13, %s2707_s14  ;;  %s3556_s14 = sld [smem:[#allocation29_spill]] }
  0xfd   : > { %1035 = vrot.lane.b32.xlu0 %v3017_v10, %s2708_s13 }
 0x105   : > { %1037 = vrot.lane.b32.xlu0 %v3021_v12, %s2708_s13 }
 0x10d   : > { %1375 = vrot.lane.b32.xlu0 %v3021_v12, %s2709_s25 }
 0x115   : > { %1208 = vrot.lane.b32.xlu0 %v3021_v12, %s2710_s0 }
 0x11d   : > { %1202 = vrot.lane.b32.xlu0 %v3017_v10, %s2711_s21 }
 0x137   : > { %v1040_v40 = vpop.permute.xlu2 %1039 }
 0x157   : > { %v846_v14 = vpop.permute.xlu0 %845 }
 0x158   : > { %2221 = vmatpush.xpose.msk.msra.mxu1 %vm847_vm2, %v846_v14 }
 0x15f   : > { %v844_v15 = vpop.permute.xlu0 %843 }
 0x160   : > { %2222 = vmatpush.xpose.msk.msra.mxu1 %vm847_vm2, %v844_v15 }
 0x163   : > { %2223 = vmatmul.msk.f32.vlgmr.msra.gmra.mxu1 %vm847_vm2, %v3017_v10 }
 0x167   : > { %v2412_v16 = vpop.permute.xlu0 %2411 }
 0x168   : > { %v2413_v17 = vunpack.i.l.bf16 %v2412_v16  ;;  %v2414_v18 = vunpack.i.h.bf16 %v2412_v16 }
 0x16a   : > { %1024 = vmatpush.msra.mxu2 %v2413_v17 }
 0x16b   : > { %2224 = vmatmul.msk.f32.gmra.mxu1 %vm847_vm2, %v3021_v12 }
 0x16c   : > { %1025 = vmatpush.msra.mxu2 %v2414_v18 }
 0x16f   : > { %v3044_v19 = vpop.permute.xlu0 %1035 }
 0x177   : > { %v1038_v20 = vpop.permute.xlu0 %1037 }
 0x17f   : > { %v1376_v21 = vpop.permute.xlu0 %1375 }
 0x187   : > { %v1209_v22 = vpop.permute.xlu0 %1208 }
 0x188   : > { %2237 = vmatpush.xpose.msk.msrb.mxu0 %vm847_vm2, %v1209_v22 }
 0x18f   : > { %v1203_v4 = vpop.permute.xlu0 %1202 }
 0x1e0   : > { %v873_v23 = vpop.f32.mrf.mxu1 }
 0x1e1   : > { %v879_v24 = vmul.f32 0.35355338, %v873_v23 }
 0x1e3   : > { %v882_v25 = vsel %vm881_vm3, %v879_v24, -inf }
 0x1e4   : > { %883 = vmax.xlane.f32.xlu1 %v882_v25 }
 0x1e8   : > { %v876_v26 = vpop.f32.mrf.mxu1 }
 0x1e9   : > { %v880_v27 = vmul.f32 0.35355338, %v876_v26 }
 0x1eb   : > { %v885_v28 = vsel %vm881_vm3, %v880_v27, -inf }
 0x1ec   : > { %886 = vmax.xlane.f32.xlu1 %v885_v28 }
 0x205   : > { %1041 = vrot.lane.b32.xlu1 %v3021_v12, %s2705_s23  ;;  %s3555_s23 = scalar_lea.vmem %s3554_s5, %s2941_s24 }
 0x20d   : > { %1369 = vrot.lane.b32.xlu1 %v3017_v10, %s2712_s30 }
 0x215   : > { %1371 = vrot.lane.b32.xlu1 %v3021_v12, %s2712_s30 }
 0x257   : > { %v884_v29 = vpop.xlane.xlu1 %883 }
 0x258   : > { %v888_v30 = vsub.f32 %v879_v24, %v884_v29 }
 0x25a   : > { %v890_v31 = vmul.f32 1.442695, %v888_v30 }
 0x25c   : > { %2445 = vpow2.f32 %v890_v31 }
 0x25f   : > { %v887_v32 = vpop.xlane.xlu1 %886 }
 0x260   : > { %v889_v33 = vsub.f32 %v880_v27, %v887_v32 }
 0x262   : > { %v2446_v34 = vpop.eup %2445  ;;  %v892_v35 = vmul.f32 1.442695, %v889_v33 }
 0x263   : > { %v894_v36 = vsel %vm881_vm3, %v2446_v34, 0.0 }
 0x264   : > { %2447 = vpow2.f32 %v892_v35  ;;  %895 = vadd.xlane.f32.xlu2 %v894_v36 }
 0x26a   : > { %v2448_v37 = vpop.eup %2447 }
 0x26b   : > { %v897_v38 = vsel %vm881_vm3, %v2448_v37, 0.0 }
 0x26c   : > { %898 = vadd.xlane.f32.xlu2 %v897_v38 }
 0x277   : > { %v1042_v39 = vpop.permute.xlu1 %1041 }
 0x278   : > { %2227 = vmatpush.xpose.msk.msrb.mxu2 %vm847_vm2, %v1042_v39  ;;  %2282 = vmatpush.xpose.msk.msra.mxu3 %vm847_vm2, %v1042_v39 }
 0x27c   : > { %2228 = vmatpush.xpose.msk.msrb.mxu2 %vm847_vm2, %v1040_v40  ;;  %2283 = vmatpush.xpose.msk.msra.mxu3 %vm847_vm2, %v1040_v40 }
 0x27f   : > { %2230 = vmatmul.msk.f32.vlgmr.msra.gmra.mxu3 %vm847_vm2, %v1038_v20  ;;  %v1370_v56 = vpop.permute.xlu1 %1369 }
 0x280   : > { %2247 = vmatpush.xpose.msk.msrb.mxu3 %vm847_vm2, %v1376_v21 }
 0x284   : > { %1373 = vrot.lane.b32.xlu2 %v3017_v10, %s2709_s25 }
 0x287   : > { %v1372_v5 = vpop.permute.xlu1 %1371 }
 0x28c   : > { %1206 = vrot.lane.b32.xlu2 %v3017_v10, %s2710_s0 }
 0x294   : > { %1204 = vrot.lane.b32.xlu2 %v3021_v12, %s2711_s21  ;;  %s3557_s21 = scalar_lea.vmem %s3467_s7, %s2941_s24  ;;  %s3558_s24 = sld [smem:[#allocation15_spill]] }
 0x29a   : > { %p2261_p8 = scmp.ne.s32.totalorder %s3558_s24, 1 }
 0x2d7   : > { %v896_v41 = vpop.xlane.xlu2 %895 }
 0x2d8   : > { %2449 = vrcp.f32 %v896_v41  ;;  %v911_v46 = vand.u32 2147483648, %v896_v41  ;;  %v909_v48 = vand.u32 2147483647, %v896_v41  ;;  %vm905_vm5 = vweird.f32 %v896_v41 }
 0x2da   : > { %v912_v51 = vor.u32 1.1754944e-38, %v911_v46  ;;  %vm910_vm7 = vcmp.eq.f32.partialorder %v909_v48, 8.507059e+37 }
 0x2de   : > { %v2450_v42 = vpop.eup %2449 }
 0x2df   : > { %v901_v43 = vmul.f32 %v2450_v42, %v896_v41  ;;  %v899_v44 = vpop.xlane.xlu2 %898  ;;  %vm906_vm4 = vweird.f32 %v2450_v42 }
 0x2e0   : > { %2451 = vrcp.f32 %v899_v44  ;;  %vm907_vm6 = vmor %vm905_vm5, %vm906_vm4  ;;  %v926_v59 = vand.u32 2147483648, %v899_v44  ;;  %v924_v61 = vand.u32 2147483647, %v899_v44  ;;  %vm920_vm9 = vweird.f32 %v899_v44 }
 0x2e1   : > { %v902_v45 = vsub.f32 1.0, %v901_v43 }
 0x2e2   : > { %v927_v63 = vor.u32 1.1754944e-38, %v926_v59  ;;  %vm925_vm11 = vcmp.eq.f32.partialorder %v924_v61, 8.507059e+37 }
 0x2e3   : > { %v903_v47 = vmul.f32 %v2450_v42, %v902_v45 }
 0x2e5   : > { %v904_v49 = vadd.f32 %v2450_v42, %v903_v47 }
 0x2e6   : > { %v2452_v50 = vpop.eup %2451 }
 0x2e7   : > { %v916_v52 = vmul.f32 %v2452_v50, %v899_v44  ;;  %v1374_v53 = vpop.permute.xlu2 %1373  ;;  %v908_v54 = vsel %vm907_vm6, %v2450_v42, %v904_v49  ;;  %vm921_vm8 = vweird.f32 %v2452_v50 }
 0x2e8   : > { %2248 = vmatpush.xpose.msk.msrb.mxu3 %vm847_vm2, %v1374_v53  ;;  %v913_v55 = vsel %vm910_vm7, %v912_v51, %v908_v54  ;;  %vm922_vm10 = vmor %vm920_vm9, %vm921_vm8 }
 0x2e9   : > { %v917_v57 = vsub.f32 1.0, %v916_v52  ;;  %v930_v58 = vmul.f32 %v2446_v34, %v913_v55 }
 0x2eb   : > { %v918_v60 = vmul.f32 %v2452_v50, %v917_v57  ;;  %932 = vst.msk [vmem:[%s2995_s22] sm:$0xff] %vm881_vm3, %v930_v58  ;;  %2225 = vmatmul.msk.f32.vlgmr.msra.gmra.mxu2 %vm881_vm3, %v930_v58  ;;  %2249 = vmatmul.msk.f32.vlgmr.msrb.gmra.mxu3 %vm847_vm2, %v1370_v56 }
 0x2ed   : > { %v919_v62 = vadd.f32 %v2452_v50, %v918_v60 }
 0x2ef   : > { %v1207_v0 = vpop.permute.xlu2 %1206  ;;  %v923_v1 = vsel %vm922_vm10, %v2452_v50, %v919_v62 }
 0x2f0   : > { %2238 = vmatpush.xpose.msk.msrb.mxu0 %vm847_vm2, %v1207_v0  ;;  %v928_v2 = vsel %vm925_vm11, %v927_v63, %v923_v1 }
 0x2f1   : > { %v931_v3 = vmul.f32 %v2448_v37, %v928_v2 }
 0x2f3   : > { %933 = vst.msk [vmem:[%s2995_s22 + $0x8] sm:$0xff] %vm881_vm3, %v931_v3  ;;  %2226 = vmatmul.msk.f32.gmra.mxu2 %vm881_vm3, %v931_v3  ;;  %2239 = vmatmul.msk.f32.vlgmr.msrb.gmra.mxu0 %vm847_vm2, %v1203_v4 }
 0x2f4   : > { %2250 = vmatmul.msk.f32.gmra.mxu3 %vm847_vm2, %v1372_v5 }
 0x2f7   : > { %v1205_v8 = vpop.permute.xlu2 %1204 }
 0x2fb   : > { %2229 = vmatmul.msk.f32.vlgmr.msrb.gmra.mxu2 %vm847_vm2, %v3044_v19  ;;  %2240 = vmatmul.msk.f32.gmra.mxu0 %vm847_vm2, %v1205_v8 }
 0x302   : > { %v1071_v9 = vpop.f32.mrf.mxu3 }
 0x303   : > { %v1075_v11 = vmul.f32 0.35355338, %v1071_v9 }
 0x305   : > { %v1079_v14 = vsel %vm881_vm3, %v1075_v11, -inf }
 0x306   : > { %1080 = vmax.xlane.f32.xlu0 %v1079_v14 }
 0x36e   : > { %v1027_v15 = vpop.f32.mrf.mxu2  ;;  %v1402_v16 = vpop.f32.mrf.mxu3 }
 0x36f   : > { %1033 = vst.msk [vmem:[#allocation2] sm:$0xff] %vm847_vm2, %v1027_v15  ;;  %v1408_v17 = vmul.f32 0.35355338, %v1402_v16 }
 0x370   : > { %v1235_v18 = vpop.f32.mrf.mxu0 }
 0x371   : > { %v1410_v20 = vsel %vm881_vm3, %v1408_v17, -inf  ;;  %v1241_v34 = vmul.f32 0.35355338, %v1235_v18 }
 0x372   : > { %1411 = vmax.xlane.f32.xlu2 %v1410_v20 }
 0x373   : > { %v1243_v36 = vsel %vm881_vm3, %v1241_v34, -inf }
 0x376   : > { %v1030_v21 = vpop.f32.mrf.mxu2 }
 0x377   : > { %1034 = vst.msk [vmem:[#allocation2 + $0x8] sm:$0xff] %vm847_vm2, %v1030_v21  ;;  %v1405_v19 = vpop.f32.mrf.mxu3 }
 0x378   : > { %v1409_v22 = vmul.f32 0.35355338, %v1405_v19  ;;  %v1238_v23 = vpop.f32.mrf.mxu0 }
 0x379   : > { %v1242_v24 = vmul.f32 0.35355338, %v1238_v23  ;;  %v1081_v25 = vpop.xlane.xlu0 %1080 }
 0x37a   : > { %v1083_v26 = vsub.f32 %v1075_v11, %v1081_v25  ;;  %v1413_v27 = vsel %vm881_vm3, %v1409_v22, -inf }
 0x37b   : > { %1414 = vmax.xlane.f32.xlu2 %v1413_v27  ;;  %v1246_v28 = vsel %vm881_vm3, %v1242_v24, -inf }
 0x37c   : > { %v1086_v29 = vmul.f32 1.442695, %v1083_v26  ;;  %1247 = vmax.xlane.f32.xlu0 %v1246_v28 }
 0x37e   : > { %2453 = vpow2.f32 %v1086_v29  ;;  %v1068_v30 = vpop.f32.mrf.mxu2 }
 0x37f   : > { %v1074_v31 = vmul.f32 0.35355338, %v1068_v30 }
 0x381   : > { %v1076_v32 = vsel %vm881_vm3, %v1074_v31, -inf }
 0x382   : > { %1077 = vmax.xlane.f32.xlu1 %v1076_v32 }
 0x384   : > { %v2454_v33 = vpop.eup %2453 }
 0x385   : > { %v1091_v35 = vsel %vm881_vm3, %v2454_v33, 0.0 }
 0x386   : > { %1092 = vadd.xlane.f32.xlu2 %v1091_v35 }
 0x38a   : > { %1244 = vmax.xlane.f32.xlu1 %v1243_v36 }
 0x3e5   : > { %v1412_v37 = vpop.xlane.xlu2 %1411 }
 0x3e6   : > { %v1416_v38 = vsub.f32 %v1408_v17, %v1412_v37 }
 0x3e8   : > { %v1418_v39 = vmul.f32 1.442695, %v1416_v38 }
 0x3ea   : > { %2455 = vpow2.f32 %v1418_v39 }
 0x3ee   : > { %v1415_v40 = vpop.xlane.xlu2 %1414 }
 0x3ef   : > { %v1417_v41 = vsub.f32 %v1409_v22, %v1415_v40  ;;  %v1248_v51 = vpop.xlane.xlu0 %1247 }
 0x3f0   : > { %v3090_v42 = vpop.eup %2455  ;;  %v1250_v55 = vsub.f32 %v1242_v24, %v1248_v51 }
 0x3f1   : > { %v1420_v43 = vmul.f32 1.442695, %v1417_v41  ;;  %v1422_v44 = vsel %vm881_vm3, %v3090_v42, 0.0 }
 0x3f2   : > { %1423 = vadd.xlane.f32.xlu0 %v1422_v44  ;;  %v1253_v60 = vmul.f32 1.442695, %v1250_v55 }
 0x3f3   : > { %2457 = vpow2.f32 %v1420_v43 }
 0x3f5   : > { %v1078_v45 = vpop.xlane.xlu1 %1077 }
 0x3f6   : > { %v1082_v46 = vsub.f32 %v1074_v31, %v1078_v45 }
 0x3f8   : > { %v1084_v47 = vmul.f32 1.442695, %v1082_v46 }
 0x3f9   : > { %v3094_v48 = vpop.eup %2457  ;;  %v1093_v49 = vpop.xlane.xlu2 %1092 }
 0x3fa   : > { %2459 = vpow2.f32 %v1084_v47  ;;  %v1425_v50 = vsel %vm881_vm3, %v3094_v48, 0.0  ;;  %v1120_v62 = vand.u32 2147483648, %v1093_v49  ;;  %v1118_v0 = vand.u32 2147483647, %v1093_v49 }
 0x3fb   : > { %2461 = vrcp.f32 %v1093_v49  ;;  %1426 = vadd.xlane.f32.xlu0 %v1425_v50  ;;  %vm1114_vm13 = vweird.f32 %v1093_v49 }
 0x3fc   : > { %v1121_v3 = vor.u32 1.1754944e-38, %v1120_v62  ;;  %vm1119_vm15 = vcmp.eq.f32.partialorder %v1118_v0, 8.507059e+37 }
 0x3fd   : > { %v1245_v52 = vpop.xlane.xlu1 %1244 }
 0x3fe   : > { %v1249_v53 = vsub.f32 %v1241_v34, %v1245_v52 }
 0x400   : > { %v3098_v54 = vpop.eup %2459  ;;  %v1251_v56 = vmul.f32 1.442695, %v1249_v53 }
 0x401   : > { %v2462_v57 = vpop.eup %2461  ;;  %v1088_v58 = vsel %vm881_vm3, %v3098_v54, 0.0 }
 0x402   : > { %v1110_v59 = vmul.f32 %v2462_v57, %v1093_v49  ;;  %2463 = vpow2.f32 %v1251_v56  ;;  %1089 = vadd.xlane.f32.xlu1 %v1088_v58  ;;  %vm1115_vm12 = vweird.f32 %v2462_v57 }
 0x403   : > { %2465 = vpow2.f32 %v1253_v60  ;;  %vm1116_vm14 = vmor %vm1114_vm13, %vm1115_vm12 }
 0x404   : > { %v1111_v61 = vsub.f32 1.0, %v1110_v59 }
 0x406   : > { %v1112_v63 = vmul.f32 %v2462_v57, %v1111_v61 }
 0x408   : > { %v3102_v1 = vpop.eup %2463  ;;  %v1113_v2 = vadd.f32 %v2462_v57, %v1112_v63 }
 0x409   : > { %v1255_v4 = vsel %vm881_vm3, %v3102_v1, 0.0  ;;  %v3108_v11 = vpop.eup %2465 }
 0x40a   : > { %1256 = vadd.xlane.f32.xlu2 %v1255_v4  ;;  %v1117_v5 = vsel %vm1116_vm14, %v2462_v57, %v1113_v2  ;;  %v1258_v14 = vsel %vm881_vm3, %v3108_v11, 0.0 }
 0x40b   : > { %v1122_v8 = vsel %vm1119_vm15, %v1121_v3, %v1117_v5 }
 0x40c   : > { %v3106_v9 = vmul.f32 %v2454_v33, %v1122_v8 }
 0x40e   : > { %2232 = vst.msk [vmem:[%s2995_s22 + $0x18] sm:$0xff] %vm881_vm3, %v3106_v9 }
 0x40f   : > { %2421 = vrot.lane.b32.xlu0 %v3027_v13, %s2713_s19 }
 0x412   : > { %1259 = vadd.xlane.f32.xlu2 %v1258_v14 }
 0x41b   : > { %2416 = vrot.lane.b32.xlu1 %v3027_v13, %s2714_s29  ;;  %s3559_s29 = sld [smem:[#allocation35_spill]] (!%p2261_p8) }
 0x42a   : > { %2426 = vrot.lane.b32.xlu2 %v3027_v13, %s2715_s17 }
 0x465   : > { %v1424_v15 = vpop.xlane.xlu0 %1423 }
 0x466   : > { %2467 = vrcp.f32 %v1424_v15  ;;  %v1439_v21 = vand.u32 2147483648, %v1424_v15  ;;  %v1437_v22 = vand.u32 2147483647, %v1424_v15  ;;  %vm1433_vm2 = vweird.f32 %v1424_v15 }
 0x468   : > { %v1440_v24 = vor.u32 1.1754944e-38, %v1439_v21  ;;  %vm1438_vm5 = vcmp.eq.f32.partialorder %v1437_v22, 8.507059e+37 }
 0x46c   : > { %v2468_v16 = vpop.eup %2467 }
 0x46d   : > { %v1429_v17 = vmul.f32 %v2468_v16, %v1424_v15  ;;  %vm1434_vm0 = vweird.f32 %v2468_v16 }
 0x46e   : > { %v1427_v18 = vpop.xlane.xlu0 %1426  ;;  %vm1435_vm4 = vmor %vm1433_vm2, %vm1434_vm0 }
 0x46f   : > { %v1430_v20 = vsub.f32 1.0, %v1429_v17  ;;  %2469 = vrcp.f32 %v1427_v18  ;;  %v1454_v32 = vand.u32 2147483648, %v1427_v18  ;;  %v1452_v33 = vand.u32 2147483647, %v1427_v18 }
 0x470   : > { %vm1448_vm7 = vweird.f32 %v1427_v18 }
 0x471   : > { %v1431_v19 = vmul.f32 %v2468_v16, %v1430_v20  ;;  %v1455_v38 = vor.u32 1.1754944e-38, %v1454_v32  ;;  %vm1453_vm9 = vcmp.eq.f32.partialorder %v1452_v33, 8.507059e+37  ;;  %v1538_v32 = vld [vmem:[%s2957_s28] sm:$0xff] }
 0x473   : > { %v1432_v23 = vadd.f32 %v2468_v16, %v1431_v19 }
 0x475   : > { %v2470_v25 = vpop.eup %2469  ;;  %v1436_v26 = vsel %vm1435_vm4, %v2468_v16, %v1432_v23  ;;  %v1090_v13 = vpop.xlane.xlu1 %1089 }
 0x476   : > { %v1441_v27 = vsel %vm1438_vm5, %v1440_v24, %v1436_v26  ;;  %v1444_v28 = vmul.f32 %v2470_v25, %v1427_v18  ;;  %2471 = vrcp.f32 %v1090_v13  ;;  %vm1449_vm6 = vweird.f32 %v2470_v25 }
 0x477   : > { %v3119_v29 = vmul.f32 %v3090_v42, %v1441_v27  ;;  %vm1450_vm8 = vmor %vm1448_vm7, %vm1449_vm6  ;;  %v1105_v41 = vand.u32 2147483648, %v1090_v13  ;;  %v1103_v44 = vand.u32 2147483647, %v1090_v13  ;;  %vm1099_vm11 = vweird.f32 %v1090_v13 }
 0x478   : > { %v1445_v30 = vsub.f32 1.0, %v1444_v28 }
 0x479   : > { %2251 = vst.msk [vmem:[%s2995_s22 + $0x30] sm:$0xff] %vm881_vm3, %v3119_v29  ;;  %v1106_v49 = vor.u32 1.1754944e-38, %v1105_v41  ;;  %vm1104_vm13 = vcmp.eq.f32.partialorder %v1103_v44, 8.507059e+37  ;;  %v2218_v41 = vmul.f32 -5.0, %v3021_v12 }
 0x47a   : > { %v1446_v31 = vmul.f32 %v2470_v25, %v1445_v30  ;;  %v1540_v30 = vld [vmem:[%s2957_s28 + $0x10] sm:$0xff] }
 0x47c   : > { %v2472_v34 = vpop.eup %2471  ;;  %v1447_v35 = vadd.f32 %v2470_v25, %v1446_v31  ;;  %v1539_v31 = vld [vmem:[%s2957_s28 + $0x8] sm:$0xff] }
 0x47d   : > { %v1095_v36 = vmul.f32 %v2472_v34, %v1090_v13  ;;  %v1257_v37 = vpop.xlane.xlu2 %1256  ;;  %vm1100_vm10 = vweird.f32 %v2472_v34 }
 0x47e   : > { %2473 = vrcp.f32 %v1257_v37  ;;  %v1451_v40 = vsel %vm1450_vm8, %v2470_v25, %v1447_v35  ;;  %vm1101_vm12 = vmor %vm1099_vm11, %vm1100_vm10  ;;  %v1272_v57 = vand.u32 2147483648, %v1257_v37  ;;  %v1270_v58 = vand.u32 2147483647, %v1257_v37 }
 0x47f   : > { %v1096_v39 = vsub.f32 1.0, %v1095_v36  ;;  %v1456_v42 = vsel %vm1453_vm9, %v1455_v38, %v1451_v40  ;;  %vm1266_vm15 = vweird.f32 %v1257_v37  ;;  %vm1199_vm8 = vcmask 130112  }
 0x480   : > { %v3125_v45 = vmul.f32 %v3094_v48, %v1456_v42  ;;  %v1273_v61 = vor.u32 1.1754944e-38, %v1272_v57  ;;  %vm1271_vm2 = vcmp.eq.f32.partialorder %v1270_v58, 8.507059e+37  ;;  %vm1366_vm9 = vcmask 195712  }
 0x481   : > { %v1097_v43 = vmul.f32 %v2472_v34, %v1096_v39  ;;  %vm1533_vm10 = vcmask 261312   ;;  %v786_v42 = vmul.f32 1.442695, %v2218_v41 }
 0x482   : > { %2252 = vst.msk [vmem:[%s2995_s22 + $0x38] sm:$0xff] %vm881_vm3, %v3125_v45 }
 0x483   : > { %v1098_v46 = vadd.f32 %v2472_v34, %v1097_v43 }
 0x484   : > { %v2474_v47 = vpop.eup %2473 }
 0x485   : > { %v1102_v50 = vsel %vm1101_vm12, %v2472_v34, %v1098_v46  ;;  %v1262_v51 = vmul.f32 %v2474_v47, %v1257_v37  ;;  %v1260_v52 = vpop.xlane.xlu2 %1259  ;;  %vm1267_vm14 = vweird.f32 %v2474_v47  ;;  %v2217_v46 = vmul.f32 -5.0, %v3017_v10 }
 0x486   : > { %v1107_v53 = vsel %vm1104_vm13, %v1106_v49, %v1102_v50  ;;  %2475 = vrcp.f32 %v1260_v52  ;;  %vm1268_vm0 = vmor %vm1266_vm15, %vm1267_vm14  ;;  %v1287_v14 = vand.u32 2147483648, %v1260_v52  ;;  %v1285_v20 = vand.u32 2147483647, %v1260_v52 }
 0x487   : > { %v1263_v55 = vsub.f32 1.0, %v1262_v51  ;;  %v1124_v56 = vmul.f32 %v3098_v54, %v1107_v53  ;;  %v2422_v54 = vpop.permute.xlu0 %2421  ;;  %vm1281_vm5 = vweird.f32 %v1260_v52  ;;  %2477 = vpow2.f32 %v786_v42 }
 0x488   : > { %v2423_v21 = vunpack.i.l.bf16 %v2422_v54  ;;  %v2424_v22 = vunpack.i.h.bf16 %v2422_v54  ;;  %v1288_v23 = vor.u32 1.1754944e-38, %v1287_v14  ;;  %vm1286_vm7 = vcmp.eq.f32.partialorder %v1285_v20, 8.507059e+37 }
 0x489   : > { %v1264_v48 = vmul.f32 %v2474_v47, %v1263_v55  ;;  %2231 = vst.msk [vmem:[%s2995_s22 + $0x10] sm:$0xff] %vm881_vm3, %v1124_v56  ;;  %v784_v49 = vmul.f32 1.442695, %v2217_v46 }
 0x48b   : > { %v1265_v59 = vadd.f32 %v2474_v47, %v1264_v48 }
 0x48c   : > { %v2476_v60 = vpop.eup %2475 }
 0x48d   : > { %v1277_v62 = vmul.f32 %v2476_v60, %v1260_v52  ;;  %v2427_v63 = vpop.permute.xlu2 %2426  ;;  %v2417_v0 = vpop.permute.xlu1 %2416  ;;  %v1269_v2 = vsel %vm1268_vm0, %v2474_v47, %v1265_v59  ;;  %vm1282_vm4 = vweird.f32 %v2476_v60 }
 0x48e   : > { %v2418_v3 = vunpack.i.l.bf16 %v2417_v0  ;;  %v2428_v4 = vunpack.i.l.bf16 %v2427_v63  ;;  %v1274_v8 = vsel %vm1271_vm2, %v1273_v61, %v1269_v2  ;;  %v2419_v15 = vunpack.i.h.bf16 %v2417_v0  ;;  %vm1283_vm6 = vmor %vm1281_vm5, %vm1282_vm4  ;;  %v2478_v43 = vpop.eup %2477  ;;  %v2442_v0 = vld [vmem:[%s3555_s23] ss:$0 sm:$0xff] }
 0x48f   : > { %v1278_v5 = vsub.f32 1.0, %v1277_v62  ;;  %v2429_v16 = vunpack.i.h.bf16 %v2427_v63  ;;  %v1291_v17 = vmul.f32 %v3102_v1, %v1274_v8  ;;  %v789_v44 = vadd.f32 1.0, %v2478_v43 }
 0x490   : > { %1182 = vmatpush.msra.mxu2 %v2418_v3  ;;  %1349 = vmatpush.msrb.mxu1 %v2428_v4 }
 0x491   : > { %v1279_v18 = vmul.f32 %v2476_v60, %v1278_v5  ;;  %2241 = vst.msk [vmem:[%s2995_s22 + $0x20] sm:$0xff] %vm881_vm3, %v1291_v17  ;;  %2479 = vrcp.f32 %v789_v44  ;;  %v816_v55 = vand.u32 2147483648, %v789_v44  ;;  %vm810_vm12 = vweird.f32 %v789_v44 }
 0x492   : > { %1183 = vmatpush.msra.mxu2 %v2419_v15  ;;  %1350 = vmatpush.msrb.mxu1 %v2429_v16  ;;  %2481 = vpow2.f32 %v784_v49  ;;  %v814_v12 = vand.u32 2147483647, %v789_v44  ;;  %v2719_v16 = vmov 96  }
 0x493   : > { %2235 = vmatmul.msk.f32.vlgmr.msra.gmra.mxu2 %vm881_vm3, %v1124_v56  ;;  %2245 = vmatmul.msk.f32.vlgmr.msrb.gmra.mxu1 %vm881_vm3, %v1291_v17  ;;  %v1280_v19 = vadd.f32 %v2476_v60, %v1279_v18  ;;  %v817_v57 = vor.u32 1.1754944e-38, %v816_v55 }
 0x494   : > { %1516 = vmatpush.msrb.mxu2 %v2423_v21  ;;  %vm815_vm14 = vcmp.eq.f32.partialorder %v814_v12, 8.507059e+37  ;;  %2431 = vset.pattern.permute.xlu0 %v2719_v16 }
 0x495   : > { %v1284_v1 = vsel %vm1283_vm6, %v2476_v60, %v1280_v19  ;;  %2432 = vset.pattern.permute.xlu2 %v2719_v16  ;;  %2430 = vset.pattern.permute.xlu1 %v2719_v16 }
 0x496   : > { %1517 = vmatpush.msrb.mxu2 %v2424_v22  ;;  %v1289_v24 = vsel %vm1286_vm7, %v1288_v23, %v1284_v1 }
 0x497   : > { %v1292_v25 = vmul.f32 %v3108_v11, %v1289_v24 }
 0x499   : > { %2242 = vst.msk [vmem:[%s2995_s22 + $0x28] sm:$0xff] %vm881_vm3, %v1292_v25 }
 0x49b   : > { %2236 = vmatmul.msk.f32.gmra.mxu2 %vm881_vm3, %v3106_v9  ;;  %2246 = vmatmul.msk.f32.gmra.mxu1 %vm881_vm3, %v1292_v25 }
 0x4a3   : > { %2255 = vmatmul.msk.f32.vlgmr.msrb.gmra.mxu2 %vm881_vm3, %v3119_v29  ;;  %v1541_v29 = vld [vmem:[%s2957_s28 + $0x18] sm:$0xff] }
 0x4a4   : > { %1564 = vmatpush.msra.mxu0 %v1541_v29 }
 0x4a6   : > { %1565 = vmatpush.msra.mxu0 %v1540_v30 }
 0x4a8   : > { %1566 = vmatpush.msra.mxu0 %v1539_v31 }
 0x4aa   : > { %1567 = vmatpush.msra.mxu0 %v1538_v32 }
 0x4ab   : > { %2256 = vmatmul.msk.f32.gmra.mxu2 %vm881_vm3, %v3125_v45  ;;  %v2480_v45 = vpop.eup %2479 }
 0x4ac   : > { %v806_v47 = vmul.f32 %v2480_v45, %v789_v44  ;;  %v2482_v52 = vpop.eup %2481  ;;  %vm811_vm11 = vweird.f32 %v2480_v45 }
 0x4ad   : > { %v788_v56 = vadd.f32 1.0, %v2482_v52  ;;  %vm812_vm13 = vmor %vm810_vm12, %vm811_vm11 }
 0x4ae   : > { %v807_v50 = vsub.f32 1.0, %v806_v47 }
 0x4af   : > { %2483 = vrcp.f32 %v788_v56  ;;  %v801_v14 = vand.u32 2147483648, %v788_v56  ;;  %vm795_vm0 = vweird.f32 %v788_v56  ;;  %v799_v15 = vand.u32 2147483647, %v788_v56 }
 0x4b0   : > { %v808_v51 = vmul.f32 %v2480_v45, %v807_v50 }
 0x4b1   : > { %v802_v21 = vor.u32 1.1754944e-38, %v801_v14  ;;  %vm800_vm4 = vcmp.eq.f32.partialorder %v799_v15, 8.507059e+37 }
 0x4b2   : > { %v809_v53 = vadd.f32 %v2480_v45, %v808_v51 }
 0x4b4   : > { %v813_v48 = vsel %vm812_vm13, %v2480_v45, %v809_v53 }
 0x4b5   : > { %v818_v58 = vsel %vm815_vm14, %v817_v57, %v813_v48  ;;  %v2484_v59 = vpop.eup %2483 }
 0x4b6   : > { %v821_v10 = vadd.f32 1e-05, %v818_v58  ;;  %v791_v61 = vmul.f32 %v2484_v59, %v788_v56  ;;  %vm796_vm15 = vweird.f32 %v2484_v59 }
 0x4b7   : > { %vm797_vm2 = vmor %vm795_vm0, %vm796_vm15 }
 0x4b8   : > { %v823_v60 = vmul.f32 1.0986123, %v821_v10  ;;  %v792_v63 = vsub.f32 1.0, %v791_v61 }
 0x4ba   : > { %v826_v62 = vmul.f32 1.442695, %v823_v60  ;;  %v793_v2 = vmul.f32 %v2484_v59, %v792_v63 }
 0x4bc   : > { %2485 = vpow2.f32 %v826_v62  ;;  %v794_v54 = vadd.f32 %v2484_v59, %v793_v2 }
 0x4be   : > { %v798_v18 = vsel %vm797_vm2, %v2484_v59, %v794_v54  ;;  %v1637_v54 = vld [vmem:[%s2966_s20 + $0x10] sm:$0xff] }
 0x4bf   : > { %v803_v22 = vsel %vm800_vm4, %v802_v21, %v798_v18 }
 0x4c0   : > { %v820_v1 = vadd.f32 1e-05, %v803_v22 }
 0x4c2   : > { %v2486_v5 = vpop.eup %2485 }
 0x4c3   : > { %v3165_v20 = vadd.f32 -1.0, %v2486_v5  ;;  %v1636_v5 = vld [vmem:[%s2966_s20 + $0x8] sm:$0xff] }
 0x4c5   : > { %2487 = vrcp.f32 %v3165_v20  ;;  %v960_v30 = vand.u32 2147483648, %v3165_v20  ;;  %vm954_vm6 = vweird.f32 %v3165_v20 }
 0x4cb   : > { %v2488_v25 = vpop.eup %2487 }
 0x4cc   : > { %vm955_vm5 = vweird.f32 %v2488_v25 }
 0x4cd   : > { %vm956_vm7 = vmor %vm954_vm6, %vm955_vm5 }
 0x510   : > { %v1352_v26 = vpop.f32.mrf.mxu1 }
 0x511   : > { %1360 = vrot.lane.b32.xlu1 %v1352_v26, %s2716_s16  ;;  %v822_v26 = vmul.f32 1.0986123, %v820_v1  ;;  %v3218_v1 = vld [vmem:[%s2986_s12] sm:$0xf] }
 0x516   : > { %v1185_v11 = vpop.f32.mrf.mxu2 }
 0x518   : > { %v1355_v27 = vpop.f32.mrf.mxu1 }
 0x519   : > { %1193 = vrot.lane.b32.xlu1 %v1185_v11, %s3503_s26  ;;  %v950_v11 = vmul.f32 %v2488_v25, %v3165_v20 }
 0x51e   : > { %v1188_v9 = vpop.f32.mrf.mxu2 }
 0x521   : > { %1195 = vrot.lane.b32.xlu1 %v1188_v9, %s3503_s26  ;;  %v824_v9 = vmul.f32 1.442695, %v822_v26 }
 0x523   : > { %2489 = vpow2.f32 %v824_v9 }
 0x526   : > { %v1519_v13 = vpop.f32.mrf.mxu2 }
 0x527   : > { %1527 = vrot.lane.b32.xlu0 %v1519_v13, %s2718_s27  ;;  %v951_v13 = vsub.f32 1.0, %v950_v11  ;;  %v1629_v11 = vperm.slane %v3218_v1, 0 }
 0x52e   : > { %v1522_v28 = vpop.f32.mrf.mxu2 }
 0x52f   : > { %1362 = vrot.lane.b32.xlu0 %v1355_v27, %s2716_s16  ;;  %1529 = vrot.lane.b32.xlu2 %v1522_v28, %s2718_s27  ;;  %v952_v27 = vmul.f32 %v2488_v25, %v951_v13  ;;  %v2490_v28 = vpop.eup %2489  ;;  %s3560_s27 = sld [smem:[#allocation36_spill]] (!%p2261_p8) }
 0x530   : > { %v2219_v31 = vadd.f32 -1.0, %v2490_v28 }
 0x531   : > { %v953_v29 = vadd.f32 %v2488_v25, %v952_v27 }
 0x532   : > { %v945_v10 = vand.u32 2147483648, %v2219_v31  ;;  %vm939_vm12 = vweird.f32 %v2219_v31  ;;  %v943_v59 = vand.u32 2147483647, %v2219_v31 }
 0x533   : > { %v957_v32 = vsel %vm956_vm7, %v2488_v25, %v953_v29  ;;  %v1632_v29 = vperm.slane %v3218_v1, 1 }
 0x534   : > { %v946_v61 = vor.u32 1.1754944e-38, %v945_v10  ;;  %vm944_vm14 = vcmp.eq.f32.partialorder %v943_v59, 8.507059e+37  ;;  %v1685_v10 = vld [vmem:[%s2980_s4 + $0x58] sm:$0xff] }
 0x583   : > { %v1361_v33 = vpop.permute.xlu1 %1360 }
 0x589   : > { %v1530_v39 = vpop.permute.xlu2 %1529 }
 0x58b   : > { %v1194_v34 = vpop.permute.xlu1 %1193 }
 0x58c   : > { %1200 = vst.msk [vmem:[#allocation2] sm:$0xff] %vm1199_vm8, %v1194_v34 }
 0x58d   : > { %1367 = vst.msk [vmem:[#allocation2] sm:$0xff] %vm1366_vm9, %v1361_v33  ;;  %v961_v33 = vor.u32 1.1754944e-38, %v960_v30  ;;  %v3226_v30 = vld [vmem:[%s3556_s14 + $0x8] sm:$0xff] }
 0x593   : > { %v1196_v35 = vpop.permute.xlu1 %1195 }
 0x594   : > { %1201 = vst.msk [vmem:[#allocation2 + $0x8] sm:$0xff] %vm1199_vm8, %v1196_v35 }
 0x599   : > { %v1528_v36 = vpop.permute.xlu0 %1527 }
 0x59a   : > { %1534 = vst.msk [vmem:[#allocation2] sm:$0xff] %vm1533_vm10, %v1528_v36  ;;  %v2721_v36 = vmov 32.0  }
 0x59b   : > { %2491 = vrcp.f32 %v2721_v36 }
 0x59c   : > { %2493 = vrcp.f32 %v2219_v31 }
 0x5a1   : > { %v1363_v37 = vpop.permute.xlu0 %1362  ;;  %v1536_v38 = vld [vmem:[#allocation2] sm:$0xff] }
 0x5a2   : > { %1368 = vst.msk [vmem:[#allocation2 + $0x8] sm:$0xff] %vm1366_vm9, %v1363_v37  ;;  %2257 = vmatmul.msk.f32.vlgmr.msra.gmra.mxu0 %vm750_vm1, %v1536_v38  ;;  %v2492_v37 = vpop.eup %2491 }
 0x5a3   : > { %1535 = vst.msk [vmem:[#allocation2 + $0x8] sm:$0xff] %vm1533_vm10, %v1530_v39  ;;  %v1585_v38 = vmul.f32 32.0, %v2492_v37  ;;  %vm1589_vm9 = vweird.f32 %v2492_v37  ;;  %v2494_v52 = vpop.eup %2493  ;;  %vm838_vm10 = vcmask 31744  }
 0x5a4   : > { %v935_v56 = vmul.f32 %v2494_v52, %v2219_v31  ;;  %vm940_vm11 = vweird.f32 %v2494_v52 }
 0x5a5   : > { %v1586_v39 = vsub.f32 1.0, %v1585_v38  ;;  %vm941_vm13 = vmor %vm939_vm12, %vm940_vm11 }
 0x5a6   : > { %v936_v12 = vsub.f32 1.0, %v935_v56  ;;  %v1689_v56 = vld [vmem:[%s2980_s4 + $0x78] sm:$0xff] }
 0x5a7   : > { %1694 = vmatpush.msra.mxu3 %v1689_v56 }
 0x5a8   : > { %v937_v48 = vmul.f32 %v2494_v52, %v936_v12  ;;  %v1688_v12 = vld [vmem:[%s2980_s4 + $0x70] sm:$0xff] }
 0x5a9   : > { %1695 = vmatpush.msra.mxu3 %v1688_v12 }
 0x5aa   : > { %v1537_v40 = vld [vmem:[#allocation2 + $0x8] sm:$0xff]  ;;  %v938_v58 = vadd.f32 %v2494_v52, %v937_v48 }
 0x5ab   : > { %2258 = vmatmul.msk.f32.gmra.mxu0 %vm750_vm1, %v1537_v40  ;;  %v1587_v40 = vmul.f32 %v2492_v37, %v1586_v39  ;;  %v1687_v48 = vld [vmem:[%s2980_s4 + $0x68] sm:$0xff] }
 0x5ac   : > { %v942_v60 = vsel %vm941_vm13, %v2494_v52, %v938_v58  ;;  %1696 = vmatpush.msra.mxu3 %v1687_v48 }
 0x5ad   : > { %v1588_v41 = vadd.f32 %v2492_v37, %v1587_v40  ;;  %v947_v62 = vsel %vm944_vm14, %v946_v61, %v942_v60  ;;  %v3236_v40 = vld [vmem:[%s3556_s14] sm:$0xff]  ;;  %v1684_v60 = vld [vmem:[%s2980_s4 + $0x50] sm:$0xff]  ;;  %v1683_v61 = vld [vmem:[%s2980_s4 + $0x48] sm:$0xff] }
 0x5ae   : > { %v3196_v63 = vmul.f32 0.3989423, %v947_v62 }
 0x5af   : > { %v3178_v42 = vsel %vm1589_vm9, %v2492_v37, %v1588_v41 }
 0x61f   : > { %v1569_v3 = vpop.f32.mrf.mxu0 }
 0x620   : > { %v1570_v4 = vadd.f32 %v2442_v0, %v1569_v3  ;;  %v2722_v3 = vmov 97  }
 0x622   : > { %v1576_v8 = vadd.f32 %v1570_v4, %v3003_v6  ;;  %v1638_v4 = vld [vmem:[%s2966_s20 + $0x18] sm:$0xff] }
 0x623   : > { %1661 = vmatpush.msra.mxu1 %v1638_v4 }
 0x624   : > { %v1578_v17 = vsel %vm750_vm1, %v1576_v8, 0.0 }
 0x625   : > { %1579 = vadd.xlane.f32.xlu1 %v1578_v17  ;;  %1662 = vmatpush.msra.mxu1 %v1637_v54  ;;  %v1681_v54 = vld [vmem:[%s2980_s4 + $0x38] sm:$0xff] }
 0x627   : > { %1663 = vmatpush.msra.mxu1 %v1636_v5 }
 0x628   : > { %v1572_v19 = vpop.f32.mrf.mxu0 }
 0x629   : > { %v1573_v23 = vadd.f32 %v2442_v0, %v1572_v19  ;;  %v3199_v0 = vmul.f32 %v947_v62, %v947_v62 }
 0x62b   : > { %v1577_v6 = vadd.f32 %v1573_v23, %v3008_v7  ;;  %v958_v7 = vand.u32 2147483647, %v3165_v20 }
 0x62d   : > { %v1581_v24 = vsel %vm750_vm1, %v1577_v6, 0.0  ;;  %vm959_vm8 = vcmp.eq.f32.partialorder %v958_v7, 8.507059e+37 }
 0x62e   : > { %1582 = vadd.xlane.f32.xlu0 %v1581_v24  ;;  %v962_v34 = vsel %vm959_vm8, %v961_v33, %v957_v32 }
 0x62f   : > { %v3175_v35 = vmul.f32 %v962_v34, %v962_v34  ;;  %v3202_v2 = vmul.f32 0.3989423, %v962_v34 }
 0x642   : > { %832 = vrot.lane.b32.xlu0 %v2219_v31, %s2720_s15 }
 0x64a   : > { %975 = vperm.xlu0 %2431, %v3175_v35  }
 0x698   : > { %v1580_v43 = vpop.xlane.xlu1 %1579 }
 0x699   : > { %v1591_v44 = vmul.f32 %v3178_v42, %v1580_v43 }
 0x69b   : > { %v3181_v45 = vsub.f32 %v1576_v8, %v1591_v44  ;;  %v1635_v8 = vld [vmem:[%s2966_s20] sm:$0xff] }
 0x69c   : > { %1664 = vmatpush.msra.mxu1 %v1635_v8  ;;  %v1680_v8 = vld [vmem:[%s2980_s4 + $0x30] sm:$0xff] }
 0x69d   : > { %v1595_v46 = vmul.f32 %v3181_v45, %v3181_v45 }
 0x69f   : > { %v1597_v47 = vsel %vm750_vm1, %v1595_v46, 0.0 }
 0x6a0   : > { %1598 = vadd.xlane.f32.xlu2 %v1597_v47 }
 0x6a1   : > { %v1583_v49 = vpop.xlane.xlu0 %1582 }
 0x6a2   : > { %v1592_v50 = vmul.f32 %v3178_v42, %v1583_v49 }
 0x6a4   : > { %v3187_v51 = vsub.f32 %v1577_v6, %v1592_v50 }
 0x6a6   : > { %v1596_v53 = vmul.f32 %v3187_v51, %v3187_v51 }
 0x6a8   : > { %v1600_v55 = vsel %vm750_vm1, %v1596_v53, 0.0 }
 0x6a9   : > { %1601 = vadd.xlane.f32.xlu1 %v1600_v55 }
 0x6b4   : > { %v833_v57 = vpop.permute.xlu0 %832 }
 0x6b5   : > { %839 = vst.msk [vmem:[%s2991_s6] sm:$0xff] %vm838_vm10, %v833_v57  ;;  %v1686_v57 = vld [vmem:[%s2980_s4 + $0x60] sm:$0xff] }
 0x6b6   : > { %1697 = vmatpush.msra.mxu3 %v1686_v57 }
 0x6b8   : > { %834 = vrot.lane.b32.xlu2 %v3165_v20, %s2720_s15  ;;  %1698 = vmatpush.msra.mxu3 %v1685_v10 }
 0x6ba   : > { %1699 = vmatpush.msra.mxu3 %v1684_v60 }
 0x6bc   : > { %v976_v31 = vpop.permute.xlu0 %975  ;;  %1700 = vmatpush.msra.mxu3 %v1683_v61 }
 0x6bd   : > { %v979_v33 = vmul.f32 %v976_v31, %v3226_v30  ;;  %v2723_v31 = vmov 98  }
 0x6be   : > { %2434 = vset.pattern.permute.xlu0 %v2723_v31 }
 0x6bf   : > { %v982_v38 = vmul.f32 1.442695, %v979_v33 }
 0x6c0   : > { %986 = vperm.xlu2 %2432, %v3196_v63  }
 0x6c2   : > { %970 = vperm.xlu1 %2430, %v3199_v0  }
 0x6c8   : > { %2435 = vset.pattern.permute.xlu2 %v2723_v31 }
 0x6ca   : > { %991 = vperm.xlu1 %2430, %v3202_v2  }
 0x6d2   : > { %2433 = vset.pattern.permute.xlu1 %v2722_v3  ;;  %v1682_v3 = vld [vmem:[%s2980_s4 + $0x40] sm:$0xff] }
 0x6d3   : > { %1130 = vperm.xlu1 %2433, %v3199_v0   ;;  %1701 = vmatpush.msra.mxu3 %v1682_v3 }
 0x6d5   : > { %1702 = vmatpush.msra.mxu3 %v1681_v54 }
 0x6d7   : > { %1703 = vmatpush.msra.mxu3 %v1680_v8 }
 0x6db   : > { %1134 = vperm.xlu1 %2433, %v3175_v35  }
 0x6e3   : > { %1144 = vperm.xlu1 %2433, %v3196_v63  }
 0x6eb   : > { %1148 = vperm.xlu1 %2433, %v3202_v2  }
 0x713   : > { %v1599_v14 = vpop.xlane.xlu2 %1598 }
 0x714   : > { %v1603_v15 = vmul.f32 %v1599_v14, %v3178_v42  ;;  %v1679_v14 = vld [vmem:[%s2980_s4 + $0x28] sm:$0xff] }
 0x715   : > { %1704 = vmatpush.msra.mxu3 %v1679_v14 }
 0x716   : > { %v1605_v16 = vadd.f32 1e-05, %v1603_v15 }
 0x718   : > { %2495 = vrsqrt.f32 %v1605_v16  ;;  %vm1613_vm0 = vweird.f32 %v1605_v16 }
 0x71b   : > { %v835_v17 = vpop.permute.xlu2 %834 }
 0x71c   : > { %840 = vst.msk [vmem:[%s2991_s6 + $0x8] sm:$0xff] %vm838_vm10, %v835_v17  ;;  %v1602_v18 = vpop.xlane.xlu1 %1601 }
 0x71d   : > { %v1604_v20 = vmul.f32 %v1602_v18, %v3178_v42 }
 0x71e   : > { %v2496_v21 = vpop.eup %2495 }
 0x71f   : > { %v1608_v19 = vmul.f32 %v2496_v21, %v1605_v16  ;;  %v1606_v22 = vadd.f32 1e-05, %v1604_v20  ;;  %vm1614_vm15 = vweird.f32 %v2496_v21  ;;  %v1678_v16 = vld [vmem:[%s2980_s4 + $0x20] sm:$0xff] }
 0x720   : > { %vm1615_vm2 = vmor %vm1613_vm0, %vm1614_vm15  ;;  %1705 = vmatpush.msra.mxu3 %v1678_v16 }
 0x721   : > { %v1609_v23 = vmul.f32 %v2496_v21, %v1608_v19  ;;  %2497 = vrsqrt.f32 %v1606_v22  ;;  %vm1623_vm5 = vweird.f32 %v1606_v22 }
 0x722   : > { %2499 = vpow2.f32 %v982_v38 }
 0x723   : > { %v1610_v6 = vmul.f32 0.5, %v1609_v23  ;;  %v987_v53 = vpop.permute.xlu2 %986 }
 0x725   : > { %v1611_v24 = vsub.f32 1.5, %v1610_v6  ;;  %v1676_v6 = vld [vmem:[%s2980_s4 + $0x10] sm:$0xff] }
 0x727   : > { %v2498_v25 = vpop.eup %2497  ;;  %v1612_v26 = vmul.f32 %v2496_v21, %v1611_v24  ;;  %v1675_v24 = vld [vmem:[%s2980_s4 + $0x8] sm:$0xff] }
 0x728   : > { %v1618_v9 = vmul.f32 %v2498_v25, %v1606_v22  ;;  %vm1624_vm4 = vweird.f32 %v2498_v25  ;;  %v2500_v49 = vpop.eup %2499 }
 0x729   : > { %v1616_v13 = vsel %vm1615_vm2, %v2496_v21, %v1612_v26  ;;  %vm1625_vm6 = vmor %vm1623_vm5, %vm1624_vm4  ;;  %v1677_v21 = vld [vmem:[%s2980_s4 + $0x18] sm:$0xff]  ;;  %v2443_v26 = vld [vmem:[%s3557_s21] ss:$0 sm:$0xff] }
 0x72a   : > { %v1627_v27 = vmul.f32 %v1616_v13, %v3181_v45  ;;  %v1619_v28 = vmul.f32 %v2498_v25, %v1618_v9  ;;  %1706 = vmatpush.msra.mxu3 %v1677_v21 }
 0x72c   : > { %v1630_v7 = vmul.f32 %v1629_v11, %v1627_v27  ;;  %v1620_v32 = vmul.f32 0.5, %v1619_v28  ;;  %1707 = vmatpush.msra.mxu3 %v1676_v6 }
 0x72e   : > { %v1621_v34 = vsub.f32 1.5, %v1620_v32  ;;  %v3229_v36 = vadd.f32 %v1632_v29, %v1630_v7  ;;  %1708 = vmatpush.msra.mxu3 %v1675_v24  ;;  %v2444_v7 = vld [vmem:[%s715_s1] ss:$0 sm:$0xff]  ;;  %v1763_v24 = vperm.slane %v3218_v1, 2 }
 0x730   : > { %v1622_v37 = vmul.f32 %v2498_v25, %v1621_v34  ;;  %2259 = vmatmul.msk.f32.vlgmr.msra.gmra.mxu1 %vm750_vm1, %v3229_v36 }
 0x732   : > { %v1626_v39 = vsel %vm1625_vm6, %v2498_v25, %v1622_v37  ;;  %v1674_v25 = vld [vmem:[%s2980_s4] sm:$0xff]  ;;  %v2724_v37 = vmov 99  }
 0x733   : > { %v1628_v41 = vmul.f32 %v1626_v39, %v3187_v51  ;;  %1709 = vmatpush.msra.mxu3 %v1674_v25  ;;  %2437 = vset.pattern.permute.xlu1 %v2724_v37 }
 0x734   : > { %v971_v43 = vpop.permute.xlu1 %970 }
 0x735   : > { %v978_v44 = vmul.f32 %v971_v43, %v3236_v40  ;;  %v1631_v45 = vmul.f32 %v1629_v11, %v1628_v41 }
 0x737   : > { %v980_v46 = vmul.f32 1.442695, %v978_v44  ;;  %v3240_v47 = vadd.f32 %v1632_v29, %v1631_v45 }
 0x739   : > { %2501 = vpow2.f32 %v980_v46  ;;  %2260 = vmatmul.msk.f32.gmra.mxu1 %vm750_vm1, %v3240_v47 }
 0x73c   : > { %v992_v50 = vpop.permute.xlu1 %991 }
 0x73d   : > { %v995_v51 = vmul.f32 %v2500_v49, %v992_v50 }
 0x73f   : > { %v2502_v52 = vpop.eup %2501  ;;  %997 = vst.msk [vmem:[%s2997_s2 + $0x8] sm:$0xff] %vm881_vm3, %v995_v51 }
 0x740   : > { %v994_v55 = vmul.f32 %v2502_v52, %v987_v53 }
 0x742   : > { %996 = vst.msk [vmem:[%s2997_s2] sm:$0xff] %vm881_vm3, %v994_v55 }
 0x745   : > { %v1131_v58 = vpop.permute.xlu1 %1130 }
 0x746   : > { %v1137_v59 = vmul.f32 %v1131_v58, %v3236_v40 }
 0x748   : > { %v1139_v62 = vmul.f32 1.442695, %v1137_v59 }
 0x74a   : > { %2503 = vpow2.f32 %v1139_v62 }
 0x74d   : > { %v1135_v4 = vpop.permute.xlu1 %1134 }
 0x74e   : > { %v1138_v5 = vmul.f32 %v1135_v4, %v3226_v30 }
 0x750   : > { %v1141_v15 = vmul.f32 1.442695, %v1138_v5  ;;  %v2504_v17 = vpop.eup %2503 }
 0x752   : > { %2505 = vpow2.f32 %v1141_v15 }
 0x755   : > { %v1145_v18 = vpop.permute.xlu1 %1144 }
 0x756   : > { %v1151_v20 = vmul.f32 %v2504_v17, %v1145_v18 }
 0x758   : > { %2233 = vst.msk [vmem:[%s2997_s2 + $0x10] sm:$0xff] %vm881_vm3, %v1151_v20  ;;  %v2506_v19 = vpop.eup %2505 }
 0x75d   : > { %v1149_v22 = vpop.permute.xlu1 %1148 }
 0x75e   : > { %v1152_v23 = vmul.f32 %v2506_v19, %v1149_v22 }
 0x760   : > { %2234 = vst.msk [vmem:[%s2997_s2 + $0x18] sm:$0xff] %vm881_vm3, %v1152_v23 }
 0x7ad   : > { %v1666_v11 = vpop.f32.mrf.mxu1 }
 0x7ae   : > { %v1667_v9 = vadd.f32 %v2443_v26, %v1666_v11  ;;  %v1766_v11 = vperm.slane %v3218_v1, 3 }
 0x7b0   : > { %v1672_v13 = vmax.f32 %v1667_v9, 0.0 }
 0x7b2   : > { %1710 = vmatmul.f32.vlgmr.msra.gmra.mxu3 %v1672_v13 }
 0x7b6   : > { %v1669_v27 = vpop.f32.mrf.mxu1 }
 0x7b7   : > { %v1670_v28 = vadd.f32 %v2443_v26, %v1669_v27 }
 0x7b9   : > { %v1673_v29 = vmax.f32 %v1670_v28, 0.0 }
 0x7bb   : > { %1713 = vmatmul.f32.gmra.mxu3 %v1673_v29 }
 0x835   : > { %v1711_v32 = vpop.f32.mrf.mxu3 }
 0x836   : > { %v1712_v33 = vadd.f32 %v2444_v7, %v1711_v32 }
 0x838   : > { %v1717_v34 = vadd.f32 %v1712_v33, %v3229_v36 }
 0x83a   : > { %v1719_v38 = vsel %vm750_vm1, %v1717_v34, 0.0 }
 0x83b   : > { %1720 = vadd.xlane.f32.xlu2 %v1719_v38 }
 0x83e   : > { %v1714_v39 = vpop.f32.mrf.mxu3 }
 0x83f   : > { %v1715_v41 = vadd.f32 %v2444_v7, %v1714_v39 }
 0x841   : > { %v1718_v43 = vadd.f32 %v1715_v41, %v3240_v47 }
 0x843   : > { %v1722_v44 = vsel %vm750_vm1, %v1718_v43, 0.0 }
 0x844   : > { %1723 = vadd.xlane.f32.xlu0 %v1722_v44 }
 0x853   : > { %1301 = vperm.xlu2 %2435, %v3175_v35  }
 0x858   : > { %1297 = vperm.xlu0 %2434, %v3199_v0  }
 0x85b   : > { %2436 = vset.pattern.permute.xlu2 %v2724_v37 }
 0x85c   : > { %1464 = vperm.xlu2 %2436, %v3199_v0  }
 0x860   : > { %1315 = vperm.xlu0 %2434, %v3202_v2  }
 0x864   : > { %2438 = vset.pattern.permute.xlu2 %v2723_v31 }
 0x865   : > { %1311 = vperm.xlu2 %2438, %v3196_v63  }
 0x868   : > { %2440 = vset.pattern.permute.xlu0 %v2724_v37 }
 0x869   : > { %1482 = vperm.xlu0 %2440, %v3202_v2  }
 0x86d   : > { %2439 = vset.pattern.permute.xlu2 %v2724_v37 }
 0x8ae   : > { %v1721_v36 = vpop.xlane.xlu2 %1720 }
 0x8af   : > { %v1725_v45 = vmul.f32 %v1721_v36, %v3178_v42 }
 0x8b1   : > { %v1727_v46 = vsub.f32 %v1717_v34, %v1725_v45 }
 0x8b3   : > { %v1729_v47 = vmul.f32 %v1727_v46, %v1727_v46 }
 0x8b5   : > { %v1731_v49 = vsel %vm750_vm1, %v1729_v47, 0.0 }
 0x8b6   : > { %1732 = vadd.xlane.f32.xlu1 %v1731_v49  ;;  %v1302_v2 = vpop.permute.xlu2 %1301 }
 0x8b7   : > { %v1724_v50 = vpop.xlane.xlu0 %1723  ;;  %v1305_v55 = vmul.f32 %v1302_v2, %v3226_v30 }
 0x8b8   : > { %v1726_v0 = vmul.f32 %v1724_v50, %v3178_v42 }
 0x8b9   : > { %v1308_v56 = vmul.f32 1.442695, %v1305_v55 }
 0x8ba   : > { %v3293_v51 = vsub.f32 %v1718_v43, %v1726_v0 }
 0x8bb   : > { %2507 = vpow2.f32 %v1308_v56 }
 0x8bc   : > { %v1730_v52 = vmul.f32 %v3293_v51, %v3293_v51 }
 0x8be   : > { %v1734_v53 = vsel %vm750_vm1, %v1730_v52, 0.0  ;;  %v1465_v48 = vpop.permute.xlu2 %1464 }
 0x8bf   : > { %1735 = vadd.xlane.f32.xlu2 %v1734_v53  ;;  %v1471_v5 = vmul.f32 %v1465_v48, %v3236_v40 }
 0x8c1   : > { %v2508_v10 = vpop.eup %2507 }
 0x8c6   : > { %v1312_v62 = vpop.permute.xlu2 %1311 }
 0x8ca   : > { %v1298_v12 = vpop.permute.xlu0 %1297 }
 0x8cb   : > { %v1304_v57 = vmul.f32 %v1298_v12, %v3236_v40 }
 0x8cd   : > { %v1306_v58 = vmul.f32 1.442695, %v1304_v57 }
 0x8cf   : > { %2509 = vpow2.f32 %v1306_v58  ;;  %1468 = vperm.xlu1 %2437, %v3175_v35   ;;  %v1473_v35 = vmul.f32 1.442695, %v1471_v5 }
 0x8d2   : > { %v1316_v59 = vpop.permute.xlu0 %1315 }
 0x8d3   : > { %v1319_v60 = vmul.f32 %v2508_v10, %v1316_v59 }
 0x8d5   : > { %v2510_v61 = vpop.eup %2509  ;;  %2244 = vst.msk [vmem:[%s2997_s2 + $0x28] sm:$0xff] %vm881_vm3, %v1319_v60 }
 0x8d6   : > { %v1318_v3 = vmul.f32 %v2510_v61, %v1312_v62 }
 0x8d7   : > { %1478 = vperm.xlu2 %2439, %v3196_v63  }
 0x8d8   : > { %2243 = vst.msk [vmem:[%s2997_s2 + $0x20] sm:$0xff] %vm881_vm3, %v1318_v3 }
 0x8db   : > { %v1483_v41 = vpop.permute.xlu0 %1482 }
 0x929   : > { %v1733_v4 = vpop.xlane.xlu1 %1732 }
 0x92a   : > { %v1737_v54 = vmul.f32 %v1733_v4, %v3178_v42 }
 0x92c   : > { %v1739_v8 = vadd.f32 1e-05, %v1737_v54 }
 0x92e   : > { %2511 = vrsqrt.f32 %v1739_v8  ;;  %vm1747_vm8 = vweird.f32 %v1739_v8 }
 0x92f   : > { %2513 = vpow2.f32 %v1473_v35 }
 0x932   : > { %v1736_v14 = vpop.xlane.xlu2 %1735 }
 0x933   : > { %v1738_v15 = vmul.f32 %v1736_v14, %v3178_v42 }
 0x934   : > { %v2512_v16 = vpop.eup %2511 }
 0x935   : > { %v1742_v17 = vmul.f32 %v2512_v16, %v1739_v8  ;;  %v1740_v18 = vadd.f32 1e-05, %v1738_v15  ;;  %v2514_v21 = vpop.eup %2513  ;;  %vm1748_vm7 = vweird.f32 %v2512_v16 }
 0x936   : > { %vm1749_vm9 = vmor %vm1747_vm8, %vm1748_vm7 }
 0x937   : > { %v1743_v20 = vmul.f32 %v2512_v16, %v1742_v17  ;;  %2515 = vrsqrt.f32 %v1740_v18  ;;  %vm1757_vm11 = vweird.f32 %v1740_v18 }
 0x939   : > { %v1744_v63 = vmul.f32 0.5, %v1743_v20 }
 0x93a   : > { %v1479_v19 = vpop.permute.xlu2 %1478 }
 0x93b   : > { %v1745_v22 = vsub.f32 1.5, %v1744_v63  ;;  %v1485_v23 = vmul.f32 %v2514_v21, %v1479_v19 }
 0x93d   : > { %v2516_v40 = vpop.eup %2515  ;;  %v1746_v6 = vmul.f32 %v2512_v16, %v1745_v22  ;;  %2253 = vst.msk [vmem:[%s2997_s2 + $0x30] sm:$0xff] %vm881_vm3, %v1485_v23 }
 0x93e   : > { %v1752_v25 = vmul.f32 %v2516_v40, %v1740_v18  ;;  %vm1758_vm10 = vweird.f32 %v2516_v40 }
 0x93f   : > { %v1750_v26 = vsel %vm1749_vm9, %v2512_v16, %v1746_v6  ;;  %vm1759_vm12 = vmor %vm1757_vm11, %vm1758_vm10 }
 0x940   : > { %v1761_v9 = vmul.f32 %v1750_v26, %v1727_v46  ;;  %v1753_v13 = vmul.f32 %v2516_v40, %v1752_v25 }
 0x941   : > { %v1469_v27 = vpop.permute.xlu1 %1468 }
 0x942   : > { %v1764_v28 = vmul.f32 %v1763_v24, %v1761_v9  ;;  %v1754_v29 = vmul.f32 0.5, %v1753_v13  ;;  %v1472_v31 = vmul.f32 %v1469_v27, %v3226_v30 }
 0x944   : > { %v3314_v7 = vadd.f32 %v1766_v11, %v1764_v28  ;;  %v1755_v32 = vsub.f32 1.5, %v1754_v29  ;;  %v1475_v33 = vmul.f32 1.442695, %v1472_v31 }
 0x946   : > { %v1756_v34 = vmul.f32 %v2516_v40, %v1755_v32  ;;  %2517 = vpow2.f32 %v1475_v33 }
 0x948   : > { %v1760_v37 = vsel %vm1759_vm12, %v2516_v40, %v1756_v34 }
 0x949   : > { %v1762_v1 = vmul.f32 %v1760_v37, %v3293_v51 }
 0x94b   : > { %v1765_v38 = vmul.f32 %v1763_v24, %v1762_v1  ;;  %1772 = sbr.rel (%p2261_p8) target bundleno = 2661 (0xa65), region = 80 }
 0x94c   : > { %v2518_v39 = vpop.eup %2517 }
 0x94d   : > { %v3317_v43 = vadd.f32 %v1766_v11, %v1765_v38  ;;  %v1486_v44 = vmul.f32 %v2518_v39, %v1483_v41 }
 0x94f   : > { %2254 = vst.msk [vmem:[%s2997_s2 + $0x38] sm:$0xff] %vm881_vm3, %v1486_v44 }
 0x950   : > { %v1775_v30 = vsel %vm750_vm1, %v3314_v7, 0.0  ;;  %v1778_v36 = vsel %vm750_vm1, %v3317_v43, 0.0  ;;  %v2519_v5 = vld [vmem:[%s3559_s29] ss:$0 sm:$0xff] }
 0x951   : > { %1776 = vadd.xlane.f32.xlu0 %v1775_v30  ;;  %v2520_v14 = vld [vmem:[%s3560_s27] ss:$0 sm:$0xff] }
 0x959   : > { %1779 = vadd.xlane.f32.xlu0 %v1778_v36 }
 0x9c4   : > { %v1777_v45 = vpop.xlane.xlu0 %1776 }
 0x9c5   : > { %v1781_v46 = vmul.f32 %v1777_v45, %v3178_v42 }
 0x9c7   : > { %v1783_v47 = vsub.f32 %v3314_v7, %v1781_v46 }
 0x9c9   : > { %v1785_v49 = vmul.f32 %v1783_v47, %v1783_v47 }
 0x9cb   : > { %v1787_v50 = vsel %vm750_vm1, %v1785_v49, 0.0 }
 0x9cc   : > { %1788 = vadd.xlane.f32.xlu1 %v1787_v50  ;;  %v1780_v0 = vpop.xlane.xlu0 %1779 }
 0x9cd   : > { %v1782_v51 = vmul.f32 %v1780_v0, %v3178_v42 }
 0x9cf   : > { %v1784_v52 = vsub.f32 %v3317_v43, %v1782_v51 }
 0x9d1   : > { %v1786_v53 = vmul.f32 %v1784_v52, %v1784_v52 }
 0x9d3   : > { %v1790_v2 = vsel %vm750_vm1, %v1786_v53, 0.0 }
 0x9d4   : > { %1791 = vadd.xlane.f32.xlu1 %v1790_v2 }
 0xa3f   : > { %v1789_v55 = vpop.xlane.xlu1 %1788 }
 0xa40   : > { %v1793_v56 = vmul.f32 %v1789_v55, %v3178_v42 }
 0xa42   : > { %v1795_v12 = vadd.f32 1e-05, %v1793_v56 }
 0xa44   : > { %2521 = vrsqrt.f32 %v1795_v12  ;;  %vm1803_vm13 = vweird.f32 %v1795_v12 }
 0xa47   : > { %v1792_v48 = vpop.xlane.xlu1 %1791 }
 0xa48   : > { %v1794_v57 = vmul.f32 %v1792_v48, %v3178_v42 }
 0xa4a   : > { %v2522_v58 = vpop.eup %2521  ;;  %v1796_v10 = vadd.f32 1e-05, %v1794_v57 }
 0xa4b   : > { %v1798_v59 = vmul.f32 %v2522_v58, %v1795_v12  ;;  %vm1804_vm3 = vweird.f32 %v2522_v58 }
 0xa4c   : > { %2523 = vrsqrt.f32 %v1796_v10  ;;  %vm1805_vm14 = vmor %vm1803_vm13, %vm1804_vm3  ;;  %vm1813_vm0 = vweird.f32 %v1796_v10 }
 0xa4d   : > { %v1799_v60 = vmul.f32 %v2522_v58, %v1798_v59 }
 0xa4f   : > { %v1800_v61 = vmul.f32 0.5, %v1799_v60 }
 0xa51   : > { %v1801_v62 = vsub.f32 1.5, %v1800_v61 }
 0xa52   : > { %v2524_v3 = vpop.eup %2523 }
 0xa53   : > { %v1802_v4 = vmul.f32 %v2522_v58, %v1801_v62  ;;  %v1808_v54 = vmul.f32 %v2524_v3, %v1796_v10  ;;  %vm1814_vm15 = vweird.f32 %v2524_v3 }
 0xa54   : > { %vm1815_vm2 = vmor %vm1813_vm0, %vm1814_vm15 }
 0xa55   : > { %v1806_v8 = vsel %vm1805_vm14, %v2522_v58, %v1802_v4  ;;  %v1809_v42 = vmul.f32 %v2524_v3, %v1808_v54 }
 0xa56   : > { %v1817_v35 = vmul.f32 %v1806_v8, %v1783_v47 }
 0xa57   : > { %v1810_v15 = vmul.f32 0.5, %v1809_v42 }
 0xa58   : > { %v1822_v16 = vmul.f32 %v2519_v5, %v1817_v35 }
 0xa59   : > { %v1811_v17 = vsub.f32 1.5, %v1810_v15 }
 0xa5a   : > { %v1827_v18 = vadd.f32 %v2520_v14, %v1822_v16 }
 0xa5b   : > { %v1812_v20 = vmul.f32 %v2524_v3, %v1811_v17 }
 0xa5c   : > { %1829 = vst.msk [vmem:[%s2993_s18] sm:$0xff] %vm750_vm1, %v1827_v18 }
 0xa5d   : > { %v1816_v63 = vsel %vm1815_vm2, %v2524_v3, %v1812_v20 }
 0xa5e   : > { %v1818_v21 = vmul.f32 %v1816_v63, %v1784_v52 }
 0xa60   : > { %v1823_v19 = vmul.f32 %v2519_v5, %v1818_v21 }
 0xa62   : > { %v1828_v22 = vadd.f32 %v2520_v14, %v1823_v19 }
 0xa64   : > { %1830 = vst.msk [vmem:[%s2993_s18 + $0x8] sm:$0xff] %vm750_vm1, %v1828_v22 }
 0xa65 PF: > { %s3561_s28 = sld [smem:[#allocation15_spill]] }
 0xa6b   : > { %p2262_p9 = scmp.ge.s32.totalorder %s3561_s28, 1 }
 0xa6d   : > { %1834 = sbr.rel (%p2262_p9) target bundleno = 2676 (0xa74), region = 84 }
 0xa72   : > { %1835 = vst.msk [vmem:[%s2993_s18] sm:$0xff] %vm750_vm1, %v3314_v7 }
 0xa73   : > { %1836 = vst.msk [vmem:[%s2993_s18 + $0x8] sm:$0xff] %vm750_vm1, %v3317_v43 }
 0xa74 PF: > { %s3562_s11 = sld [smem:[#allocation19_spill]]  ;;  %s1888_s0 = sshll.u32 %s2995_s22, 4  ;;  %s1889_s0 = int_to_ptr.vmem [resolvable:$true] %s1888_s0 }
 0xa75   : > { %s3564_s15 = sld [smem:[#allocation16_spill]] }
 0xa76   : > { %s3565_s6 = sld [smem:[#allocation15_spill]] }
 0xa77   : > { %s3567_s1 = sld [smem:[#allocation38_spill]] }
 0xa78   : > { %s3568_s16 = sld [smem:[#allocation39_spill]] }
 0xa7a   : > { %s3563_s23 = sadd.s32 4294967295, %s3562_s11  }
 0xa7b   : > { %s3353_s20 = sand.u32 1, %s3563_s23   ;;  %s2268_s12 = sshll.u32 %s3564_s15, 3 }
 0xa7c   : > { %s2269_s13 = sshll.u32 %s3565_s6, 4  ;;  %s2281_s11 = sshll.u32 %s3564_s15, 4 }
 0xa7d   : > { %s1885_s21 = sadd.s32 %s2269_s13, %s2268_s12  ;;  %s3569_s6 = sld [smem:[#allocation37_spill]] }
 0xa7e   : > { %s2270_s30 = sshll.u32 %s1885_s21, 3  ;;  %s1843_s22 = scalar_lea.sflag [#allocation6], %s3353_s20 }
 0xa7f   : > { %s1887_s19 = scalar_lea.hbm %s3567_s1, %s2270_s30  ;;  %s3364_s27 = scalar_lea.hbm %s3568_s16, %s2270_s30 }
 0xa80   : > { %s1890_s28 = sshll.u32 %s1887_s19, 4  ;;  %s2545_s30 = scalar_lea.hbm %s3567_s1, 256  ;;  %s1891_s28 = int_to_ptr.hbm [resolvable:$true] %s1890_s28 }
 0xa81   : > { %s2539_s12 = sshra.s32 %s1891_s28, 4  ;;  %s2540_s12 = int_to_ptr.hbm [resolvable:$true] %s2539_s12 }
 0xa82   : > { %s2541_s13 = scalar_lea.hbm %s2540_s12, 64  ;;  %p2546_p1 = scmp.lt.s32.totalorder %s2540_s12, %s3567_s1 }
 0xa83   : > { %s1868_s3 = scalar_lea.hbm %s3569_s6, %s2281_s11  ;;  %p2542_p10 = scmp.ne.s32.totalorder %s2540_s12, %s2541_s13 }
 0xa84   : > { %p2547_p4 = scmp.lt.s32.totalorder %s2545_s30, %s2541_s13 }
 0xa85   : > { %p2543_p11 = pnand %p2542_p10, %p2915_p12 }
 0xa86   : > { %p2548_p2 = por %p2547_p4, %p2546_p1 }
 0xa87   : > { %p2544_p0 = pneg %p2543_p11 }
 0xa89   : > { %p2549_p5 = pnand %p2548_p2, %p2544_p0 }
 0xa8b   : > { %2552 = shalt.err (!%p2549_p5)
}
 0xa8c   : > { %s2725_s26 = smov 128   ;;  %s3570_s15 = smov 8  }
 0xa8d   : > { %s3571_s29 = sld [smem:[#allocation13_spill]]  ;;  %s1869_s11 = sshll.u32 %s2993_s18, 4  ;;  %s1870_s11 = int_to_ptr.vmem [resolvable:$true] %s1869_s11 }
 0xa8e   : > { %2285 = dma.vmem_to_hbm [thread:$0]  (%p2915_p12), %s1889_s0, 1024, %s1891_s28, %s1843_s22, %s2725_s26, %s2725_s26, %s3570_s15  }
 0xa8f   : > { %s1871_s23 = sshll.u32 %s1868_s3, 4  ;;  %s2573_s19 = scalar_lea.hbm %s3569_s6, 32  ;;  %s1872_s23 = int_to_ptr.hbm [resolvable:$true] %s1871_s23 }
 0xa90   : > { %s2567_s21 = sshra.s32 %s1872_s23, 4  ;;  %s2568_s21 = int_to_ptr.hbm [resolvable:$true] %s2567_s21 }
 0xa91   : > { %s2569_s4 = scalar_lea.hbm %s2568_s21, 16  ;;  %p2574_p10 = scmp.lt.s32.totalorder %s2568_s21, %s3569_s6 }
 0xa92   : > { %p2570_p6 = scmp.ne.s32.totalorder %s2568_s21, %s2569_s4  ;;  %p2575_p11 = scmp.lt.s32.totalorder %s2573_s19, %s2569_s4 }
 0xa93   : > { %s3573_s12 = sand.u32 1, %s3571_s29  }
 0xa94   : > { %s1838_s13 = scalar_lea.sflag [#allocation4], %s3573_s12  ;;  %p2571_p8 = pnand %p2570_p6, %p2884_p3 }
 0xa95   : > { %p2576_p0 = por %p2575_p11, %p2574_p10 }
 0xa96   : > { %p2572_p9 = pneg %p2571_p8 }
 0xa98   : > { %p2577_p1 = pnand %p2576_p0, %p2572_p9 }
 0xa9a   : > { %2580 = shalt.err (!%p2577_p1)
}
 0xa9b   : > { %2284 = dma.vmem_to_hbm [thread:$0]  (%p2884_p3), %s1870_s11, 256, %s1872_s23, %s1838_s13, %s2725_s26, %s2725_s26, %s3570_s15  }
 0xa9c   : > { %s1907_s3 = sshll.u32 %s2997_s2, 4  ;;  %s1909_s18 = sshll.u32 %s3364_s27, 4  ;;  %s1908_s3 = int_to_ptr.vmem [resolvable:$true] %s1907_s3  ;;  %s1910_s18 = int_to_ptr.hbm [resolvable:$true] %s1909_s18 }
 0xa9d   : > { %s2595_s0 = sshra.s32 %s1910_s18, 4  ;;  %s2601_s29 = scalar_lea.hbm %s3568_s16, 256  ;;  %s2596_s0 = int_to_ptr.hbm [resolvable:$true] %s2595_s0 }
 0xa9e   : > { %s2597_s5 = scalar_lea.hbm %s2596_s0, 64  ;;  %p2602_p6 = scmp.lt.s32.totalorder %s2596_s0, %s3568_s16 }
 0xa9f   : > { %p2598_p4 = scmp.ne.s32.totalorder %s2596_s0, %s2597_s5  ;;  %p2603_p3 = scmp.lt.s32.totalorder %s2601_s29, %s2597_s5 }
 0xaa1   : > { %p2599_p2 = pnand %p2598_p4, %p2915_p12  ;;  %p2604_p8 = por %p2603_p3, %p2602_p6 }
 0xaa3   : > { %p2600_p5 = pneg %p2599_p2 }
 0xaa5   : > { %p2605_p9 = pnand %p2604_p8, %p2600_p5 }
 0xaa7   : > { %2608 = shalt.err (!%p2605_p9)
}
 0xaa8   : > { %2286 = dma.vmem_to_hbm [thread:$0]  (%p2915_p12), %s1908_s3, 1024, %s1910_s18, %s1843_s22, %s2725_s26, %s2725_s26, %s3570_s15  }
 0xaa9 PF: > { %s3574_s2 = sld [smem:[#allocation19_spill]] }
 0xaaa   : > { %s3575_s27 = sld [smem:[#allocation12_spill]] }
 0xaaf   : > { %p2300_p10 = scmp.ge.s32.totalorder %s3574_s2, 2 }
 0xab0   : > { %s1927_s23 = sand.u32 1, %s3575_s27  }
 0xab1   : > { %p2291_p11 = pnand %p2300_p10, %p2903_p7  ;;  %s1928_s13 = scalar_lea.sflag [#allocation4], %s1927_s23 }
 0xab3   : > { %p2292_p0 = pneg %p2291_p11 }
 0xab5   : > { %2654 = dma.done.wait (%p2292_p0), %s1928_s13, 256  }
 0xab6   : > { %2656 = vsyncadd (%p2292_p0), %s1928_s13, 4294967040  ;;  %s3577_s25 = sadd.s32 4294967294, %s3574_s2   ;;  %p2294_p1 = pnand %p2300_p10, %p2927_p13 }
 0xab7   : > { %s1937_s4 = sand.u32 1, %s3577_s25  }
 0xab8   : > { %p2295_p4 = pneg %p2294_p1  ;;  %s1938_s20 = scalar_lea.sflag [#allocation6], %s1937_s4 }
 0xaba   : > { %2658 = dma.done.wait (%p2295_p4), %s1938_s20, 2048  }
 0xabb   : > { %2660 = vsyncadd (%p2295_p4), %s1938_s20, 4294965248  ;;  %s33_s0 = sadd.s32 1, %s3574_s2   ;;  %s3579_s21 = sld [smem:[#allocation10_spill]] }
 0xabc   : > { %p30_p12 = scmp.ge.s32.totalorder %s33_s0, 6   ;;  %s3580_s22 = sld [smem:[#allocation11_spill]] }
 0xabd   : > { %s3581_s23 = sld [smem:[#allocation26_spill]] }
 0xabe   : > { %s3582_s24 = sld [smem:[#allocation13_spill]] }
 0xabf   : > { %s3583_s25 = sld [smem:[#allocation14_spill]] }
 0xac0   : > { %s3584_s26 = sld [smem:[#allocation25_spill]]  ;;  %32 = sbr.rel (!%p30_p12) target bundleno = 23 (0x17), region = 196 }
 0xac1   : > { %s3585_s27 = sld [smem:[#allocation17_spill]] }
 0xac2   : > { %s3586_s28 = sld [smem:[#allocation18_spill]] }
 0xac3   : > { %s3587_s29 = sld [smem:[#allocation20_spill]] }
 0xac4   : > { %s3588_s30 = sld [smem:[#allocation22_spill]] }
 0xac5   :  { %1966 = vsyncpa [#allocation4], 1 }
 0xac6   :  { %1968 = vsyncpa [#allocation4 + $0x1], 1 }
 0xac7   :  { %1969 = vsyncpa [#allocation6], 1 }
 0xac8   :  { %1971 = vsyncpa [#allocation6 + $0x1], 1 }

</bundles_post_ra>
